<compile_context>
chip_gen: v7x
topology: tpu7x:2x2x1
jax: 0.10.0
libtpu: 0.0.40
codegen_flags: <defaults>
</compile_context>

<pallas_src>
import functools

import jax
import jax.numpy as jnp
from jax.experimental import pallas as pl
from jax.experimental.pallas import tpu as pltpu


# ----------------------------------------------------------------------------
# In-kernel math helpers (pure jnp on VMEM-resident values).
# ----------------------------------------------------------------------------
def _layernorm(x, g, b, eps=1e-5):
    # PyTorch LayerNorm: mean / biased var over last dim.
    mean = jnp.mean(x, axis=-1, keepdims=True)
    var = jnp.mean((x - mean) ** 2, axis=-1, keepdims=True)
    return (x - mean) * jax.lax.rsqrt(var + eps) * g + b


def _mha(x, wqkv_t, bqkv, wo_t, bo, ctx_ref, *, num_heads):
    """Multi-head self-attention on one batch's (S, E) activations.

    x      : (S, E)    activations
    wqkv_t : (E, 3E)   pre-transposed in-projection (1/sqrt(hd) folded into Q cols)
    bqkv   : (1, 3E)   in-projection bias (Q part pre-scaled)
    wo_t   : (E, E)    pre-transposed out-projection
    bo     : (1, E)
    ctx_ref: (S, E)    VMEM scratch used to assemble per-head context so the
                       out-projection runs as ONE K=E MXU matmul.
    """
    S, E = x.shape
    H = num_heads
    hd = E // H

    # One wide MXU matmul for the whole QKV projection.
    qkv = jnp.dot(x, wqkv_t, preferred_element_type=jnp.float32) + bqkv  # (S, 3E)

    # TODO(synk): for production dims, replace the per-head loop with head-batched
    # einsums over an (H, S, hd) layout and a flash-style online softmax over S
    # tiles (needed once B*S*S scores no longer fit VMEM).
    for h in range(H):  # static unroll, H is small
        qh = qkv[:, h * hd:(h + 1) * hd]
        kh = qkv[:, E + h * hd:E + (h + 1) * hd]
        vh = qkv[:, 2 * E + h * hd:2 * E + (h + 1) * hd]

        # scores = q @ k^T  (N-T dot_general, as in the TPU flash-attention kernel)
        s = jax.lax.dot_general(qh, kh, (((1,), (1,)), ((), ())),
                                preferred_element_type=jnp.float32)      # (S, S)
        s = s - jnp.max(s, axis=-1, keepdims=True)
        p = jnp.exp(s)
        p = p * pl.reciprocal(jnp.sum(p, axis=-1, keepdims=True), approx=True)
        ctx_ref[:, h * hd:(h + 1) * hd] = jnp.dot(
            p, vh, preferred_element_type=jnp.float32)                   # (S, hd)

    # Single out-projection matmul over all heads (K = E, lane-dense).
    return jnp.dot(ctx_ref[...], wo_t, preferred_element_type=jnp.float32) + bo


# ----------------------------------------------------------------------------
# Kernel: one grid point = (batch b, layer l). Activations carried in VMEM.
# ----------------------------------------------------------------------------
def gpt2_decoder_kernel(x_ref,
                        wqkv_ref, bqkv_ref, wo_ref, bo_ref,
                        ln1g_ref, ln1b_ref,
                        w1_ref, b1_ref, w2_ref, b2_ref,
                        ln2g_ref, ln2b_ref,
                        m_wqkv_ref, m_bqkv_ref, m_wo_ref, m_bo_ref,
                        wl_ref, bl_ref,
                        o_ref,
                        x_carry, ctx_scratch, *,
                        num_heads):
    l = pl.program_id(1)

    # First layer of this batch: load activations into the VMEM carry.
    @pl.when(l == 0)
    def _():
        x_carry[...] = x_ref[...].astype(jnp.float32)

    x = x_carry[...]

    # ---- transformer block l (weights for this layer only are resident) ----
    attn = _mha(x, wqkv_ref[...], bqkv_ref[...], wo_ref[...], bo_ref[...],
                ctx_scratch, num_heads=num_heads)
    x = _layernorm(x + attn, ln1g_ref[...], ln1b_ref[...])

    h = jnp.maximum(
        jnp.dot(x, w1_ref[...], preferred_element_type=jnp.float32) + b1_ref[...],
        0.0)
    ffn = jnp.dot(h, w2_ref[...], preferred_element_type=jnp.float32) + b2_ref[...]
    x = _layernorm(x + ffn, ln2g_ref[...], ln2b_ref[...])

    x_carry[...] = x

    # ---- AttentionMapper head on the last layer iteration ------------------
    @pl.when(l == pl.num_programs(1) - 1)
    def _():
        attn_m = _mha(x, m_wqkv_ref[...], m_bqkv_ref[...],
                      m_wo_ref[...], m_bo_ref[...],
                      ctx_scratch, num_heads=num_heads)
        # One lane-dense matmul (S, E) @ (E, O*E); output stays (S, O*E) — the
        # permute to (O, B, S, E) is done in the wrapper.
        mapped = jnp.dot(attn_m, wl_ref[...],
                         preferred_element_type=jnp.float32) + bl_ref[...]
        o_ref[...] = mapped.astype(o_ref.dtype)


# ----------------------------------------------------------------------------
# Host-side parameter prep (pre-transpose / pre-scale / stack). Runs ONCE.
# ----------------------------------------------------------------------------
def prepare_params(layer_params, mapper_params, num_heads):
    E = mapper_params["wqkv"].shape[1]
    hd = E // num_heads
    scale = 1.0 / (hd ** 0.5)
    # Fold 1/sqrt(hd) into the Q columns of the in-projection weight AND bias.
    qcols = jnp.concatenate([jnp.full((E,), scale, jnp.float32),
                             jnp.ones((2 * E,), jnp.float32)])[None, :]   # (1, 3E)

    def stk(fn):
        return jnp.stack([fn(p) for p in layer_params], axis=0)

    layer_args = (
        stk(lambda p: p["wqkv"].T * qcols),   # (L, E, 3E)
        stk(lambda p: p["bqkv"] * qcols),     # (L, 1, 3E)
        stk(lambda p: p["wo"].T),             # (L, E, E)
        stk(lambda p: p["bo"]),               # (L, 1, E)
        stk(lambda p: p["ln1g"]),             # (L, 1, E)
        stk(lambda p: p["ln1b"]),             # (L, 1, E)
        stk(lambda p: p["w1"].T),             # (L, E, F)
        stk(lambda p: p["b1"]),               # (L, 1, F)
        stk(lambda p: p["w2"].T),             # (L, F, E)
        stk(lambda p: p["b2"]),               # (L, 1, E)
        stk(lambda p: p["ln2g"]),             # (L, 1, E)
        stk(lambda p: p["ln2b"]),             # (L, 1, E)
    )
    mapper_args = (
        mapper_params["wqkv"].T * qcols,      # (E, 3E)
        mapper_params["bqkv"] * qcols,        # (1, 3E)
        mapper_params["wo"].T,                # (E, E)
        mapper_params["bo"],                  # (1, E)
        mapper_params["wl"].T,                # (E, O*E)  (lane-dense, fused slabs)
        mapper_params["bl"],                  # (1, O*E)
    )
    # TODO(synk): for v6e/v7x production runs, cast weights to bf16 (and fp8 on v7x
    # for wqkv/w1/w2) here; keep LayerNorm/softmax statistics in f32 in-kernel.
    return layer_args, mapper_args


def gpt2_decoder_forward(x, prepped, num_heads, output_size):
    B, S, E = x.shape
    layer_args, mapper_args = prepped
    L = layer_args[0].shape[0]
    OE = output_size * E

    kernel = functools.partial(gpt2_decoder_kernel, num_heads=num_heads)

    # Per-batch activation block; per-layer weight blocks; resident mapper weights.
    x_spec = pl.BlockSpec((None, S, E), lambda b, l: (b, 0, 0))
    layer_specs = [pl.BlockSpec((None,) + a.shape[1:], lambda b, l: (l, 0, 0))
                   for a in layer_args]
    mapper_specs = [pl.BlockSpec(a.shape, lambda b, l: (0, 0))
                    for a in mapper_args]

    # TODO(synk): for real GPT-2 dims, additionally tile B*S rows in >=256-row
    # (8,128)-aligned blocks and stream w1/w2 over a K axis; compute a
    # vmem_limit_bytes from actual operand bytes with headroom instead of defaults.
    out2d = pl.pallas_call(
        kernel,
        grid=(B, L),
        in_specs=[x_spec] + layer_specs + mapper_specs,
        out_specs=pl.BlockSpec((None, S, OE), lambda b, l: (b, 0, 0)),
        out_shape=jax.ShapeDtypeStruct((B, S, OE), x.dtype),
        scratch_shapes=[pltpu.VMEM((S, E), jnp.float32),   # x carried across layers
                        pltpu.VMEM((S, E), jnp.float32)],  # per-head context assembly
        compiler_params=pltpu.CompilerParams(
            dimension_semantics=("parallel", "arbitrary")),
    )(x, *layer_args, *mapper_args)

    # mapped.view(B,S,O,E).permute(2,0,1,3) done in the wrapper (kernel store stays
    # lane-dense at O*E lanes).
    return out2d.reshape(B, S, output_size, E).transpose(2, 0, 1, 3)


# ----------------------------------------------------------------------------
# Deterministic parameter init (PyTorch-layout shapes, as in the nn.Module).
# ----------------------------------------------------------------------------
def _init_linear(key, out_dim, in_dim, scale=0.05):
    kw, kb = jax.random.split(key)
    w = scale * jax.random.normal(kw, (out_dim, in_dim), jnp.float32)
    b = scale * jax.random.normal(kb, (1, out_dim), jnp.float32)
    return w, b


def init_params(key, embed_dim, num_heads, num_layers, feedforward_dim, output_size):
    E, F = embed_dim, feedforward_dim
    layer_params = []
    keys = jax.random.split(key, num_layers + 1)
    for li in range(num_layers):
        k = jax.random.split(keys[li], 4)
        wqkv, bqkv = _init_linear(k[0], 3 * E, E)
        wo, bo = _init_linear(k[1], E, E)
        w1, b1 = _init_linear(k[2], F, E)
        w2, b2 = _init_linear(k[3], E, F)
        layer_params.append(dict(
            wqkv=wqkv, bqkv=bqkv, wo=wo, bo=bo,
            ln1g=jnp.ones((1, E), jnp.float32), ln1b=jnp.zeros((1, E), jnp.float32),
            w1=w1, b1=b1, w2=w2, b2=b2,
            ln2g=jnp.ones((1, E), jnp.float32), ln2b=jnp.zeros((1, E), jnp.float32)))
    km = jax.random.split(keys[-1], 3)
    m_wqkv, m_bqkv = _init_linear(km[0], 3 * E, E)
    m_wo, m_bo = _init_linear(km[1], E, E)
    wl, bl = _init_linear(km[2], E * output_size, E)
    mapper_params = dict(wqkv=m_wqkv, bqkv=m_bqkv, wo=m_wo, bo=m_bo, wl=wl, bl=bl)
    return layer_params, mapper_params


# ----------------------------------------------------------------------------
# Independent pure-JAX reference (original weight layout, per-head loop + concat)
# ----------------------------------------------------------------------------
def _ref_mha(x, wqkv, bqkv, wo, bo, num_heads):
    S, E = x.shape
    hd = E // num_heads
    scale = 1.0 / (hd ** 0.5)
    qkv = x @ wqkv.T + bqkv
    q, k, v = qkv[:, :E], qkv[:, E:2 * E], qkv[:, 2 * E:]
    outs = []
    for h in range(num_heads):
        qh = q[:, h * hd:(h + 1) * hd] * scale
        kh = k[:, h * hd:(h + 1) * hd]
        vh = v[:, h * hd:(h + 1) * hd]
        s = qh @ kh.T
        s = s - jnp.max(s, axis=-1, keepdims=True)
        p = jnp.exp(s)
        p = p / jnp.sum(p, axis=-1, keepdims=True)
        outs.append(p @ vh)
    return jnp.concatenate(outs, axis=-1) @ wo.T + bo


def ref_forward(x, layer_params, mapper_params, num_heads, output_size):
    B, S, E = x.shape

    def block(xb, p):
        a = _ref_mha(xb, p["wqkv"], p["bqkv"], p["wo"], p["bo"], num_heads)
        xb = _layernorm(xb + a, p["ln1g"], p["ln1b"])
        h = jnp.maximum(xb @ p["w1"].T + p["b1"], 0.0)
        f = h @ p["w2"].T + p["b2"]
        return _layernorm(xb + f, p["ln2g"], p["ln2b"])

    for p in layer_params:
        x = jax.vmap(lambda xb, p=p: block(xb, p))(x)

    def mapf(xb):
        a = _ref_mha(xb, mapper_params["wqkv"], mapper_params["bqkv"],
                     mapper_params["wo"], mapper_params["bo"], num_heads)
        return a @ mapper_params["wl"].T + mapper_params["bl"]

    m = jax.vmap(mapf)(x)
    return m.reshape(B, S, output_size, E).transpose(2, 0, 1, 3)


# ----------------------------------------------------------------------------
if __name__ == "__main__":
    embed_dim = 32
    num_heads = 4
    num_layers = 2
    feedforward_dim = 64
    output_size = 8
    B, S = 2, 8

    key = jax.random.PRNGKey(0)
    kx, kp = jax.random.split(key)
    x = jax.random.normal(kx, (B, S, embed_dim), jnp.float32)
    layer_params, mapper_params = init_params(
        kp, embed_dim, num_heads, num_layers, feedforward_dim, output_size)

    # Host-side prep runs ONCE (outside the per-call path).
    prepped = prepare_params(layer_params, mapper_params, num_heads)

    out = gpt2_decoder_forward(x, prepped, num_heads, output_size)
    out = jax.block_until_ready(out)

    ref = ref_forward(x, layer_params, mapper_params, num_heads, output_size)
    assert out.shape == (output_size, B, S, embed_dim), out.shape
    assert jnp.allclose(out, ref, atol=2e-3, rtol=2e-3), "mismatch vs reference"

    print("KERNEL_OK")
</pallas_src>

<mosaic_0001>
module attributes {stable_mosaic.version = 11 : i64} {
  func.func @gpt2_decoder_kernel(%arg0: i32, %arg1: i32, %arg2: memref<1x8x32xf32, #tpu.memory_space<vmem>>, %arg3: memref<1x32x96xf32, #tpu.memory_space<vmem>>, %arg4: memref<1x1x96xf32, #tpu.memory_space<vmem>>, %arg5: memref<1x32x32xf32, #tpu.memory_space<vmem>>, %arg6: memref<1x1x32xf32, #tpu.memory_space<vmem>>, %arg7: memref<1x1x32xf32, #tpu.memory_space<vmem>>, %arg8: memref<1x1x32xf32, #tpu.memory_space<vmem>>, %arg9: memref<1x32x64xf32, #tpu.memory_space<vmem>>, %arg10: memref<1x1x64xf32, #tpu.memory_space<vmem>>, %arg11: memref<1x64x32xf32, #tpu.memory_space<vmem>>, %arg12: memref<1x1x32xf32, #tpu.memory_space<vmem>>, %arg13: memref<1x1x32xf32, #tpu.memory_space<vmem>>, %arg14: memref<1x1x32xf32, #tpu.memory_space<vmem>>, %arg15: memref<32x96xf32, #tpu.memory_space<vmem>>, %arg16: memref<1x96xf32, #tpu.memory_space<vmem>>, %arg17: memref<32x32xf32, #tpu.memory_space<vmem>>, %arg18: memref<1x32xf32, #tpu.memory_space<vmem>>, %arg19: memref<32x256xf32, #tpu.memory_space<vmem>>, %arg20: memref<1x256xf32, #tpu.memory_space<vmem>>, %arg21: memref<1x8x256xf32, #tpu.memory_space<vmem>>, %arg22: memref<8x32xf32, #tpu.memory_space<vmem>>, %arg23: memref<8x32xf32, #tpu.memory_space<vmem>>) attributes {dimension_semantics = [#tpu.dimension_semantics<parallel>, #tpu.dimension_semantics<arbitrary>], iteration_bounds = array<i64: 2, 2>, scalar_prefetch = 0 : i64, scratch_operands = 2 : i64, tpu.core_type = #tpu.core_type<tc>, window_params = [{transform_indices = @transform_0, window_bounds = array<i64: 1, 8, 32>}, {transform_indices = @transform_1, window_bounds = array<i64: 1, 32, 96>}, {transform_indices = @transform_2, window_bounds = array<i64: 1, 1, 96>}, {transform_indices = @transform_3, window_bounds = array<i64: 1, 32, 32>}, {transform_indices = @transform_4, window_bounds = array<i64: 1, 1, 32>}, {transform_indices = @transform_5, window_bounds = array<i64: 1, 1, 32>}, {transform_indices = @transform_6, window_bounds = array<i64: 1, 1, 32>}, {transform_indices = @transform_7, window_bounds = array<i64: 1, 32, 64>}, {transform_indices = @transform_8, window_bounds = array<i64: 1, 1, 64>}, {transform_indices = @transform_9, window_bounds = array<i64: 1, 64, 32>}, {transform_indices = @transform_10, window_bounds = array<i64: 1, 1, 32>}, {transform_indices = @transform_11, window_bounds = array<i64: 1, 1, 32>}, {transform_indices = @transform_12, window_bounds = array<i64: 1, 1, 32>}, {pipeline_mode = #tpu.pipeline_mode<synchronous>, transform_indices = @transform_13, window_bounds = array<i64: 32, 96>}, {pipeline_mode = #tpu.pipeline_mode<synchronous>, transform_indices = @transform_14, window_bounds = array<i64: 1, 96>}, {pipeline_mode = #tpu.pipeline_mode<synchronous>, transform_indices = @transform_15, window_bounds = array<i64: 32, 32>}, {pipeline_mode = #tpu.pipeline_mode<synchronous>, transform_indices = @transform_16, window_bounds = array<i64: 1, 32>}, {pipeline_mode = #tpu.pipeline_mode<synchronous>, transform_indices = @transform_17, window_bounds = array<i64: 32, 256>}, {pipeline_mode = #tpu.pipeline_mode<synchronous>, transform_indices = @transform_18, window_bounds = array<i64: 1, 256>}, {transform_indices = @transform_19, window_bounds = array<i64: 1, 8, 256>}]} {
    %c0_i32 = arith.constant 0 : i32
    %0 = arith.cmpi eq, %arg1, %c0_i32 : i32
    %1 = arith.extui %0 : i1 to i32
    %c0_i32_0 = arith.constant 0 : i32
    %2 = arith.cmpi ne, %1, %c0_i32_0 : i32
    scf.if %2 {
      %c0_78 = arith.constant 0 : index
      %c0_79 = arith.constant 0 : index
      %c0_80 = arith.constant 0 : index
      %157 = vector.load %arg2[%c0_78, %c0_79, %c0_80] : memref<1x8x32xf32, #tpu.memory_space<vmem>>, vector<1x8x32xf32>
      %158 = vector.shape_cast %157 : vector<1x8x32xf32> to vector<8x32xf32>
      %c0_81 = arith.constant 0 : index
      %c0_82 = arith.constant 0 : index
      %159 = vector.load %arg22[%c0_81, %c0_82] : memref<8x32xf32, #tpu.memory_space<vmem>>, vector<8x32xf32>
      tpu.vector_store %arg22[%c0_81, %c0_82], %158 {strides = array<i32>} : memref<8x32xf32, #tpu.memory_space<vmem>>, vector<8x32xf32>,
    } else {
    }
    %c0 = arith.constant 0 : index
    %c0_1 = arith.constant 0 : index
    %3 = vector.load %arg22[%c0, %c0_1] : memref<8x32xf32, #tpu.memory_space<vmem>>, vector<8x32xf32>
    %c0_2 = arith.constant 0 : index
    %c0_3 = arith.constant 0 : index
    %c0_4 = arith.constant 0 : index
    %4 = vector.load %arg3[%c0_2, %c0_3, %c0_4] : memref<1x32x96xf32, #tpu.memory_space<vmem>>, vector<1x32x96xf32>
    %5 = vector.shape_cast %4 : vector<1x32x96xf32> to vector<32x96xf32>
    %c0_5 = arith.constant 0 : index
    %c0_6 = arith.constant 0 : index
    %c0_7 = arith.constant 0 : index
    %6 = vector.load %arg4[%c0_5, %c0_6, %c0_7] : memref<1x1x96xf32, #tpu.memory_space<vmem>>, vector<1x1x96xf32>
    %7 = vector.shape_cast %6 : vector<1x1x96xf32> to vector<1x96xf32>
    %c0_8 = arith.constant 0 : index
    %c0_9 = arith.constant 0 : index
    %c0_10 = arith.constant 0 : index
    %8 = vector.load %arg5[%c0_8, %c0_9, %c0_10] : memref<1x32x32xf32, #tpu.memory_space<vmem>>, vector<1x32x32xf32>
    %9 = vector.shape_cast %8 : vector<1x32x32xf32> to vector<32x32xf32>
    %c0_11 = arith.constant 0 : index
    %c0_12 = arith.constant 0 : index
    %c0_13 = arith.constant 0 : index
    %10 = vector.load %arg6[%c0_11, %c0_12, %c0_13] : memref<1x1x32xf32, #tpu.memory_space<vmem>>, vector<1x1x32xf32>
    %11 = vector.shape_cast %10 : vector<1x1x32xf32> to vector<1x32xf32>
    %cst = arith.constant dense<0.000000e+00> : vector<8x96xf32>
    %12 = tpu.matmul %3, %5, %cst {dimension_numbers = #tpu.dot_dimension_numbers<[1], [0], [0], [1], [0, 0, 1, 1], [], []>} : vector<8x32xf32>, vector<32x96xf32>, vector<8x96xf32> -> vector<8x96xf32>
    %13 = vector.broadcast %7 : vector<1x96xf32> to vector<8x96xf32>
    %14 = arith.addf %12, %13 : vector<8x96xf32>
    %15 = vector.extract_strided_slice %14 {offsets = [0, 0], sizes = [8, 8], strides = [1, 1]} : vector<8x96xf32> to vector<8x8xf32>
    %16 = vector.extract_strided_slice %14 {offsets = [0, 32], sizes = [8, 8], strides = [1, 1]} : vector<8x96xf32> to vector<8x8xf32>
    %17 = vector.extract_strided_slice %14 {offsets = [0, 64], sizes = [8, 8], strides = [1, 1]} : vector<8x96xf32> to vector<8x8xf32>
    %cst_14 = arith.constant dense<0.000000e+00> : vector<8x8xf32>
    %18 = tpu.matmul %15, %16, %cst_14 {dimension_numbers = #tpu.dot_dimension_numbers<[1], [1], [0], [0], [0, 0, 1, 0], [], []>} : vector<8x8xf32>, vector<8x8xf32>, vector<8x8xf32> -> vector<8x8xf32>
    %cst_15 = arith.constant dense<0xFF800000> : vector<8xf32>
    %19 = vector.multi_reduction <maximumf>, %18, %cst_15 [1] : vector<8x8xf32> to vector<8xf32>
    %20 = vector.shape_cast %19 : vector<8xf32> to vector<8x1xf32>
    %21 = vector.broadcast %20 : vector<8x1xf32> to vector<8x8xf32>
    %22 = arith.subf %18, %21 : vector<8x8xf32>
    %23 = math.exp %22 : vector<8x8xf32>
    %cst_16 = arith.constant dense<0.000000e+00> : vector<8xf32>
    %24 = vector.multi_reduction <add>, %23, %cst_16 [1] : vector<8x8xf32> to vector<8xf32>
    %25 = vector.shape_cast %24 : vector<8xf32> to vector<8x1xf32>
    %26 = tpu.reciprocal %25 {approx = true} : vector<8x1xf32> -> vector<8x1xf32>
    %27 = vector.broadcast %26 : vector<8x1xf32> to vector<8x8xf32>
    %28 = arith.mulf %23, %27 : vector<8x8xf32>
    %cst_17 = arith.constant dense<0.000000e+00> : vector<8x8xf32>
    %29 = tpu.matmul %28, %17, %cst_17 {dimension_numbers = #tpu.dot_dimension_numbers<[1], [0], [0], [1], [0, 0, 1, 1], [], []>} : vector<8x8xf32>, vector<8x8xf32>, vector<8x8xf32> -> vector<8x8xf32>
    %c0_18 = arith.constant 0 : index
    %c0_19 = arith.constant 0 : index
    %30 = vector.load %arg23[%c0_18, %c0_19] : memref<8x32xf32, #tpu.memory_space<vmem>>, vector<8x8xf32>
    tpu.vector_store %arg23[%c0_18, %c0_19], %29 {strides = array<i32>} : memref<8x32xf32, #tpu.memory_space<vmem>>, vector<8x8xf32>,
    %31 = vector.extract_strided_slice %14 {offsets = [0, 8], sizes = [8, 8], strides = [1, 1]} : vector<8x96xf32> to vector<8x8xf32>
    %32 = vector.extract_strided_slice %14 {offsets = [0, 40], sizes = [8, 8], strides = [1, 1]} : vector<8x96xf32> to vector<8x8xf32>
    %33 = vector.extract_strided_slice %14 {offsets = [0, 72], sizes = [8, 8], strides = [1, 1]} : vector<8x96xf32> to vector<8x8xf32>
    %cst_20 = arith.constant dense<0.000000e+00> : vector<8x8xf32>
    %34 = tpu.matmul %31, %32, %cst_20 {dimension_numbers = #tpu.dot_dimension_numbers<[1], [1], [0], [0], [0, 0, 1, 0], [], []>} : vector<8x8xf32>, vector<8x8xf32>, vector<8x8xf32> -> vector<8x8xf32>
    %cst_21 = arith.constant dense<0xFF800000> : vector<8xf32>
    %35 = vector.multi_reduction <maximumf>, %34, %cst_21 [1] : vector<8x8xf32> to vector<8xf32>
    %36 = vector.shape_cast %35 : vector<8xf32> to vector<8x1xf32>
    %37 = vector.broadcast %36 : vector<8x1xf32> to vector<8x8xf32>
    %38 = arith.subf %34, %37 : vector<8x8xf32>
    %39 = math.exp %38 : vector<8x8xf32>
    %cst_22 = arith.constant dense<0.000000e+00> : vector<8xf32>
    %40 = vector.multi_reduction <add>, %39, %cst_22 [1] : vector<8x8xf32> to vector<8xf32>
    %41 = vector.shape_cast %40 : vector<8xf32> to vector<8x1xf32>
    %42 = tpu.reciprocal %41 {approx = true} : vector<8x1xf32> -> vector<8x1xf32>
    %43 = vector.broadcast %42 : vector<8x1xf32> to vector<8x8xf32>
    %44 = arith.mulf %39, %43 : vector<8x8xf32>
    %cst_23 = arith.constant dense<0.000000e+00> : vector<8x8xf32>
    %45 = tpu.matmul %44, %33, %cst_23 {dimension_numbers = #tpu.dot_dimension_numbers<[1], [0], [0], [1], [0, 0, 1, 1], [], []>} : vector<8x8xf32>, vector<8x8xf32>, vector<8x8xf32> -> vector<8x8xf32>
    %c0_24 = arith.constant 0 : index
    %c8 = arith.constant 8 : index
    %46 = vector.load %arg23[%c0_24, %c8] : memref<8x32xf32, #tpu.memory_space<vmem>>, vector<8x8xf32>
    tpu.vector_store %arg23[%c0_24, %c8], %45 {strides = array<i32>} : memref<8x32xf32, #tpu.memory_space<vmem>>, vector<8x8xf32>,
    %47 = vector.extract_strided_slice %14 {offsets = [0, 16], sizes = [8, 8], strides = [1, 1]} : vector<8x96xf32> to vector<8x8xf32>
    %48 = vector.extract_strided_slice %14 {offsets = [0, 48], sizes = [8, 8], strides = [1, 1]} : vector<8x96xf32> to vector<8x8xf32>
    %49 = vector.extract_strided_slice %14 {offsets = [0, 80], sizes = [8, 8], strides = [1, 1]} : vector<8x96xf32> to vector<8x8xf32>
    %cst_25 = arith.constant dense<0.000000e+00> : vector<8x8xf32>
    %50 = tpu.matmul %47, %48, %cst_25 {dimension_numbers = #tpu.dot_dimension_numbers<[1], [1], [0], [0], [0, 0, 1, 0], [], []>} : vector<8x8xf32>, vector<8x8xf32>, vector<8x8xf32> -> vector<8x8xf32>
    %cst_26 = arith.constant dense<0xFF800000> : vector<8xf32>
    %51 = vector.multi_reduction <maximumf>, %50, %cst_26 [1] : vector<8x8xf32> to vector<8xf32>
    %52 = vector.shape_cast %51 : vector<8xf32> to vector<8x1xf32>
    %53 = vector.broadcast %52 : vector<8x1xf32> to vector<8x8xf32>
    %54 = arith.subf %50, %53 : vector<8x8xf32>
    %55 = math.exp %54 : vector<8x8xf32>
    %cst_27 = arith.constant dense<0.000000e+00> : vector<8xf32>
    %56 = vector.multi_reduction <add>, %55, %cst_27 [1] : vector<8x8xf32> to vector<8xf32>
    %57 = vector.shape_cast %56 : vector<8xf32> to vector<8x1xf32>
    %58 = tpu.reciprocal %57 {approx = true} : vector<8x1xf32> -> vector<8x1xf32>
    %59 = vector.broadcast %58 : vector<8x1xf32> to vector<8x8xf32>
    %60 = arith.mulf %55, %59 : vector<8x8xf32>
    %cst_28 = arith.constant dense<0.000000e+00> : vector<8x8xf32>
    %61 = tpu.matmul %60, %49, %cst_28 {dimension_numbers = #tpu.dot_dimension_numbers<[1], [0], [0], [1], [0, 0, 1, 1], [], []>} : vector<8x8xf32>, vector<8x8xf32>, vector<8x8xf32> -> vector<8x8xf32>
    %c0_29 = arith.constant 0 : index
    %c16 = arith.constant 16 : index
    %62 = vector.load %arg23[%c0_29, %c16] : memref<8x32xf32, #tpu.memory_space<vmem>>, vector<8x8xf32>
    tpu.vector_store %arg23[%c0_29, %c16], %61 {strides = array<i32>} : memref<8x32xf32, #tpu.memory_space<vmem>>, vector<8x8xf32>,
    %63 = vector.extract_strided_slice %14 {offsets = [0, 24], sizes = [8, 8], strides = [1, 1]} : vector<8x96xf32> to vector<8x8xf32>
    %64 = vector.extract_strided_slice %14 {offsets = [0, 56], sizes = [8, 8], strides = [1, 1]} : vector<8x96xf32> to vector<8x8xf32>
    %65 = vector.extract_strided_slice %14 {offsets = [0, 88], sizes = [8, 8], strides = [1, 1]} : vector<8x96xf32> to vector<8x8xf32>
    %cst_30 = arith.constant dense<0.000000e+00> : vector<8x8xf32>
    %66 = tpu.matmul %63, %64, %cst_30 {dimension_numbers = #tpu.dot_dimension_numbers<[1], [1], [0], [0], [0, 0, 1, 0], [], []>} : vector<8x8xf32>, vector<8x8xf32>, vector<8x8xf32> -> vector<8x8xf32>
    %cst_31 = arith.constant dense<0xFF800000> : vector<8xf32>
    %67 = vector.multi_reduction <maximumf>, %66, %cst_31 [1] : vector<8x8xf32> to vector<8xf32>
    %68 = vector.shape_cast %67 : vector<8xf32> to vector<8x1xf32>
    %69 = vector.broadcast %68 : vector<8x1xf32> to vector<8x8xf32>
    %70 = arith.subf %66, %69 : vector<8x8xf32>
    %71 = math.exp %70 : vector<8x8xf32>
    %cst_32 = arith.constant dense<0.000000e+00> : vector<8xf32>
    %72 = vector.multi_reduction <add>, %71, %cst_32 [1] : vector<8x8xf32> to vector<8xf32>
    %73 = vector.shape_cast %72 : vector<8xf32> to vector<8x1xf32>
    %74 = tpu.reciprocal %73 {approx = true} : vector<8x1xf32> -> vector<8x1xf32>
    %75 = vector.broadcast %74 : vector<8x1xf32> to vector<8x8xf32>
    %76 = arith.mulf %71, %75 : vector<8x8xf32>
    %cst_33 = arith.constant dense<0.000000e+00> : vector<8x8xf32>
    %77 = tpu.matmul %76, %65, %cst_33 {dimension_numbers = #tpu.dot_dimension_numbers<[1], [0], [0], [1], [0, 0, 1, 1], [], []>} : vector<8x8xf32>, vector<8x8xf32>, vector<8x8xf32> -> vector<8x8xf32>
    %c0_34 = arith.constant 0 : index
    %c24 = arith.constant 24 : index
    %78 = vector.load %arg23[%c0_34, %c24] : memref<8x32xf32, #tpu.memory_space<vmem>>, vector<8x8xf32>
    tpu.vector_store %arg23[%c0_34, %c24], %77 {strides = array<i32>} : memref<8x32xf32, #tpu.memory_space<vmem>>, vector<8x8xf32>,
    %c0_35 = arith.constant 0 : index
    %c0_36 = arith.constant 0 : index
    %79 = vector.load %arg23[%c0_35, %c0_36] : memref<8x32xf32, #tpu.memory_space<vmem>>, vector<8x32xf32>
    %cst_37 = arith.constant dense<0.000000e+00> : vector<8x32xf32>
    %80 = tpu.matmul %79, %9, %cst_37 {dimension_numbers = #tpu.dot_dimension_numbers<[1], [0], [0], [1], [0, 0, 1, 1], [], []>} : vector<8x32xf32>, vector<32x32xf32>, vector<8x32xf32> -> vector<8x32xf32>
    %81 = vector.broadcast %11 : vector<1x32xf32> to vector<8x32xf32>
    %82 = arith.addf %80, %81 : vector<8x32xf32>
    %83 = arith.addf %3, %82 : vector<8x32xf32>
    %c0_38 = arith.constant 0 : index
    %c0_39 = arith.constant 0 : index
    %c0_40 = arith.constant 0 : index
    %84 = vector.load %arg7[%c0_38, %c0_39, %c0_40] : memref<1x1x32xf32, #tpu.memory_space<vmem>>, vector<1x1x32xf32>
    %85 = vector.shape_cast %84 : vector<1x1x32xf32> to vector<1x32xf32>
    %c0_41 = arith.constant 0 : index
    %c0_42 = arith.constant 0 : index
    %c0_43 = arith.constant 0 : index
    %86 = vector.load %arg8[%c0_41, %c0_42, %c0_43] : memref<1x1x32xf32, #tpu.memory_space<vmem>>, vector<1x1x32xf32>
    %87 = vector.shape_cast %86 : vector<1x1x32xf32> to vector<1x32xf32>
    %cst_44 = arith.constant dense<0.000000e+00> : vector<8xf32>
    %88 = vector.multi_reduction <add>, %83, %cst_44 [1] : vector<8x32xf32> to vector<8xf32>
    %89 = vector.shape_cast %88 : vector<8xf32> to vector<8x1xf32>
    %cst_45 = arith.constant 3.200000e+01 : f32
    %90 = vector.broadcast %cst_45 : f32 to vector<8x1xf32>
    %91 = arith.divf %89, %90 : vector<8x1xf32>
    %92 = vector.broadcast %91 : vector<8x1xf32> to vector<8x32xf32>
    %93 = arith.subf %83, %92 : vector<8x32xf32>
    %94 = arith.mulf %93, %93 : vector<8x32xf32>
    %cst_46 = arith.constant dense<0.000000e+00> : vector<8xf32>
    %95 = vector.multi_reduction <add>, %94, %cst_46 [1] : vector<8x32xf32> to vector<8xf32>
    %96 = vector.shape_cast %95 : vector<8xf32> to vector<8x1xf32>
    %cst_47 = arith.constant 3.200000e+01 : f32
    %97 = vector.broadcast %cst_47 : f32 to vector<8x1xf32>
    %98 = arith.divf %96, %97 : vector<8x1xf32>
    %99 = vector.broadcast %91 : vector<8x1xf32> to vector<8x32xf32>
    %100 = arith.subf %83, %99 : vector<8x32xf32>
    %cst_48 = arith.constant 9.99999974E-6 : f32
    %101 = vector.broadcast %cst_48 : f32 to vector<8x1xf32>
    %102 = arith.addf %98, %101 : vector<8x1xf32>
    %103 = math.rsqrt %102 : vector<8x1xf32>
    %104 = vector.broadcast %103 : vector<8x1xf32> to vector<8x32xf32>
    %105 = arith.mulf %100, %104 : vector<8x32xf32>
    %106 = vector.broadcast %85 : vector<1x32xf32> to vector<8x32xf32>
    %107 = arith.mulf %105, %106 : vector<8x32xf32>
    %108 = vector.broadcast %87 : vector<1x32xf32> to vector<8x32xf32>
    %109 = arith.addf %107, %108 : vector<8x32xf32>
    %c0_49 = arith.constant 0 : index
    %c0_50 = arith.constant 0 : index
    %c0_51 = arith.constant 0 : index
    %110 = vector.load %arg9[%c0_49, %c0_50, %c0_51] : memref<1x32x64xf32, #tpu.memory_space<vmem>>, vector<1x32x64xf32>
    %111 = vector.shape_cast %110 : vector<1x32x64xf32> to vector<32x64xf32>
    %cst_52 = arith.constant dense<0.000000e+00> : vector<8x64xf32>
    %112 = tpu.matmul %109, %111, %cst_52 {dimension_numbers = #tpu.dot_dimension_numbers<[1], [0], [0], [1], [0, 0, 1, 1], [], []>} : vector<8x32xf32>, vector<32x64xf32>, vector<8x64xf32> -> vector<8x64xf32>
    %c0_53 = arith.constant 0 : index
    %c0_54 = arith.constant 0 : index
    %c0_55 = arith.constant 0 : index
    %113 = vector.load %arg10[%c0_53, %c0_54, %c0_55] : memref<1x1x64xf32, #tpu.memory_space<vmem>>, vector<1x1x64xf32>
    %114 = vector.shape_cast %113 : vector<1x1x64xf32> to vector<1x64xf32>
    %115 = vector.broadcast %114 : vector<1x64xf32> to vector<8x64xf32>
    %116 = arith.addf %112, %115 : vector<8x64xf32>
    %cst_56 = arith.constant 0.000000e+00 : f32
    %117 = vector.broadcast %cst_56 : f32 to vector<8x64xf32>
    %118 = arith.maximumf %116, %117 : vector<8x64xf32>
    %c0_57 = arith.constant 0 : index
    %c0_58 = arith.constant 0 : index
    %c0_59 = arith.constant 0 : index
    %119 = vector.load %arg11[%c0_57, %c0_58, %c0_59] : memref<1x64x32xf32, #tpu.memory_space<vmem>>, vector<1x64x32xf32>
    %120 = vector.shape_cast %119 : vector<1x64x32xf32> to vector<64x32xf32>
    %cst_60 = arith.constant dense<0.000000e+00> : vector<8x32xf32>
    %121 = tpu.matmul %118, %120, %cst_60 {dimension_numbers = #tpu.dot_dimension_numbers<[1], [0], [0], [1], [0, 0, 1, 1], [], []>} : vector<8x64xf32>, vector<64x32xf32>, vector<8x32xf32> -> vector<8x32xf32>
    %c0_61 = arith.constant 0 : index
    %c0_62 = arith.constant 0 : index
    %c0_63 = arith.constant 0 : index
    %122 = vector.load %arg12[%c0_61, %c0_62, %c0_63] : memref<1x1x32xf32, #tpu.memory_space<vmem>>, vector<1x1x32xf32>
    %123 = vector.shape_cast %122 : vector<1x1x32xf32> to vector<1x32xf32>
    %124 = vector.broadcast %123 : vector<1x32xf32> to vector<8x32xf32>
    %125 = arith.addf %121, %124 : vector<8x32xf32>
    %126 = arith.addf %109, %125 : vector<8x32xf32>
    %c0_64 = arith.constant 0 : index
    %c0_65 = arith.constant 0 : index
    %c0_66 = arith.constant 0 : index
    %127 = vector.load %arg13[%c0_64, %c0_65, %c0_66] : memref<1x1x32xf32, #tpu.memory_space<vmem>>, vector<1x1x32xf32>
    %128 = vector.shape_cast %127 : vector<1x1x32xf32> to vector<1x32xf32>
    %c0_67 = arith.constant 0 : index
    %c0_68 = arith.constant 0 : index
    %c0_69 = arith.constant 0 : index
    %129 = vector.load %arg14[%c0_67, %c0_68, %c0_69] : memref<1x1x32xf32, #tpu.memory_space<vmem>>, vector<1x1x32xf32>
    %130 = vector.shape_cast %129 : vector<1x1x32xf32> to vector<1x32xf32>
    %cst_70 = arith.constant dense<0.000000e+00> : vector<8xf32>
    %131 = vector.multi_reduction <add>, %126, %cst_70 [1] : vector<8x32xf32> to vector<8xf32>
    %132 = vector.shape_cast %131 : vector<8xf32> to vector<8x1xf32>
    %cst_71 = arith.constant 3.200000e+01 : f32
    %133 = vector.broadcast %cst_71 : f32 to vector<8x1xf32>
    %134 = arith.divf %132, %133 : vector<8x1xf32>
    %135 = vector.broadcast %134 : vector<8x1xf32> to vector<8x32xf32>
    %136 = arith.subf %126, %135 : vector<8x32xf32>
    %137 = arith.mulf %136, %136 : vector<8x32xf32>
    %cst_72 = arith.constant dense<0.000000e+00> : vector<8xf32>
    %138 = vector.multi_reduction <add>, %137, %cst_72 [1] : vector<8x32xf32> to vector<8xf32>
    %139 = vector.shape_cast %138 : vector<8xf32> to vector<8x1xf32>
    %cst_73 = arith.constant 3.200000e+01 : f32
    %140 = vector.broadcast %cst_73 : f32 to vector<8x1xf32>
    %141 = arith.divf %139, %140 : vector<8x1xf32>
    %142 = vector.broadcast %134 : vector<8x1xf32> to vector<8x32xf32>
    %143 = arith.subf %126, %142 : vector<8x32xf32>
    %cst_74 = arith.constant 9.99999974E-6 : f32
    %144 = vector.broadcast %cst_74 : f32 to vector<8x1xf32>
    %145 = arith.addf %141, %144 : vector<8x1xf32>
    %146 = math.rsqrt %145 : vector<8x1xf32>
    %147 = vector.broadcast %146 : vector<8x1xf32> to vector<8x32xf32>
    %148 = arith.mulf %143, %147 : vector<8x32xf32>
    %149 = vector.broadcast %128 : vector<1x32xf32> to vector<8x32xf32>
    %150 = arith.mulf %148, %149 : vector<8x32xf32>
    %151 = vector.broadcast %130 : vector<1x32xf32> to vector<8x32xf32>
    %152 = arith.addf %150, %151 : vector<8x32xf32>
    %c0_75 = arith.constant 0 : index
    %c0_76 = arith.constant 0 : index
    %153 = vector.load %arg22[%c0_75, %c0_76] : memref<8x32xf32, #tpu.memory_space<vmem>>, vector<8x32xf32>
    tpu.vector_store %arg22[%c0_75, %c0_76], %152 {strides = array<i32>} : memref<8x32xf32, #tpu.memory_space<vmem>>, vector<8x32xf32>,
    %c1_i32 = arith.constant 1 : i32
    %154 = arith.cmpi eq, %arg1, %c1_i32 : i32
    %155 = arith.extui %154 : i1 to i32
    %c0_i32_77 = arith.constant 0 : i32
    %156 = arith.cmpi ne, %155, %c0_i32_77 : i32
    scf.if %156 {
      %c0_78 = arith.constant 0 : index
      %c0_79 = arith.constant 0 : index
      %157 = vector.load %arg15[%c0_78, %c0_79] : memref<32x96xf32, #tpu.memory_space<vmem>>, vector<32x96xf32>
      %c0_80 = arith.constant 0 : index
      %c0_81 = arith.constant 0 : index
      %158 = vector.load %arg16[%c0_80, %c0_81] : memref<1x96xf32, #tpu.memory_space<vmem>>, vector<1x96xf32>
      %c0_82 = arith.constant 0 : index
      %c0_83 = arith.constant 0 : index
      %159 = vector.load %arg17[%c0_82, %c0_83] : memref<32x32xf32, #tpu.memory_space<vmem>>, vector<32x32xf32>
      %c0_84 = arith.constant 0 : index
      %c0_85 = arith.constant 0 : index
      %160 = vector.load %arg18[%c0_84, %c0_85] : memref<1x32xf32, #tpu.memory_space<vmem>>, vector<1x32xf32>
      %cst_86 = arith.constant dense<0.000000e+00> : vector<8x96xf32>
      %161 = tpu.matmul %152, %157, %cst_86 {dimension_numbers = #tpu.dot_dimension_numbers<[1], [0], [0], [1], [0, 0, 1, 1], [], []>} : vector<8x32xf32>, vector<32x96xf32>, vector<8x96xf32> -> vector<8x96xf32>
      %162 = vector.broadcast %158 : vector<1x96xf32> to vector<8x96xf32>
      %163 = arith.addf %161, %162 : vector<8x96xf32>
      %164 = vector.extract_strided_slice %163 {offsets = [0, 0], sizes = [8, 8], strides = [1, 1]} : vector<8x96xf32> to vector<8x8xf32>
      %165 = vector.extract_strided_slice %163 {offsets = [0, 32], sizes = [8, 8], strides = [1, 1]} : vector<8x96xf32> to vector<8x8xf32>
      %166 = vector.extract_strided_slice %163 {offsets = [0, 64], sizes = [8, 8], strides = [1, 1]} : vector<8x96xf32> to vector<8x8xf32>
      %cst_87 = arith.constant dense<0.000000e+00> : vector<8x8xf32>
      %167 = tpu.matmul %164, %165, %cst_87 {dimension_numbers = #tpu.dot_dimension_numbers<[1], [1], [0], [0], [0, 0, 1, 0], [], []>} : vector<8x8xf32>, vector<8x8xf32>, vector<8x8xf32> -> vector<8x8xf32>
      %cst_88 = arith.constant dense<0xFF800000> : vector<8xf32>
      %168 = vector.multi_reduction <maximumf>, %167, %cst_88 [1] : vector<8x8xf32> to vector<8xf32>
      %169 = vector.shape_cast %168 : vector<8xf32> to vector<8x1xf32>
      %170 = vector.broadcast %169 : vector<8x1xf32> to vector<8x8xf32>
      %171 = arith.subf %167, %170 : vector<8x8xf32>
      %172 = math.exp %171 : vector<8x8xf32>
      %cst_89 = arith.constant dense<0.000000e+00> : vector<8xf32>
      %173 = vector.multi_reduction <add>, %172, %cst_89 [1] : vector<8x8xf32> to vector<8xf32>
      %174 = vector.shape_cast %173 : vector<8xf32> to vector<8x1xf32>
      %175 = tpu.reciprocal %174 {approx = true} : vector<8x1xf32> -> vector<8x1xf32>
      %176 = vector.broadcast %175 : vector<8x1xf32> to vector<8x8xf32>
      %177 = arith.mulf %172, %176 : vector<8x8xf32>
      %cst_90 = arith.constant dense<0.000000e+00> : vector<8x8xf32>
      %178 = tpu.matmul %177, %166, %cst_90 {dimension_numbers = #tpu.dot_dimension_numbers<[1], [0], [0], [1], [0, 0, 1, 1], [], []>} : vector<8x8xf32>, vector<8x8xf32>, vector<8x8xf32> -> vector<8x8xf32>
      %c0_91 = arith.constant 0 : index
      %c0_92 = arith.constant 0 : index
      %179 = vector.load %arg23[%c0_91, %c0_92] : memref<8x32xf32, #tpu.memory_space<vmem>>, vector<8x8xf32>
      tpu.vector_store %arg23[%c0_91, %c0_92], %178 {strides = array<i32>} : memref<8x32xf32, #tpu.memory_space<vmem>>, vector<8x8xf32>,
      %180 = vector.extract_strided_slice %163 {offsets = [0, 8], sizes = [8, 8], strides = [1, 1]} : vector<8x96xf32> to vector<8x8xf32>
      %181 = vector.extract_strided_slice %163 {offsets = [0, 40], sizes = [8, 8], strides = [1, 1]} : vector<8x96xf32> to vector<8x8xf32>
      %182 = vector.extract_strided_slice %163 {offsets = [0, 72], sizes = [8, 8], strides = [1, 1]} : vector<8x96xf32> to vector<8x8xf32>
      %cst_93 = arith.constant dense<0.000000e+00> : vector<8x8xf32>
      %183 = tpu.matmul %180, %181, %cst_93 {dimension_numbers = #tpu.dot_dimension_numbers<[1], [1], [0], [0], [0, 0, 1, 0], [], []>} : vector<8x8xf32>, vector<8x8xf32>, vector<8x8xf32> -> vector<8x8xf32>
      %cst_94 = arith.constant dense<0xFF800000> : vector<8xf32>
      %184 = vector.multi_reduction <maximumf>, %183, %cst_94 [1] : vector<8x8xf32> to vector<8xf32>
      %185 = vector.shape_cast %184 : vector<8xf32> to vector<8x1xf32>
      %186 = vector.broadcast %185 : vector<8x1xf32> to vector<8x8xf32>
      %187 = arith.subf %183, %186 : vector<8x8xf32>
      %188 = math.exp %187 : vector<8x8xf32>
      %cst_95 = arith.constant dense<0.000000e+00> : vector<8xf32>
      %189 = vector.multi_reduction <add>, %188, %cst_95 [1] : vector<8x8xf32> to vector<8xf32>
      %190 = vector.shape_cast %189 : vector<8xf32> to vector<8x1xf32>
      %191 = tpu.reciprocal %190 {approx = true} : vector<8x1xf32> -> vector<8x1xf32>
      %192 = vector.broadcast %191 : vector<8x1xf32> to vector<8x8xf32>
      %193 = arith.mulf %188, %192 : vector<8x8xf32>
      %cst_96 = arith.constant dense<0.000000e+00> : vector<8x8xf32>
      %194 = tpu.matmul %193, %182, %cst_96 {dimension_numbers = #tpu.dot_dimension_numbers<[1], [0], [0], [1], [0, 0, 1, 1], [], []>} : vector<8x8xf32>, vector<8x8xf32>, vector<8x8xf32> -> vector<8x8xf32>
      %c0_97 = arith.constant 0 : index
      %c8_98 = arith.constant 8 : index
      %195 = vector.load %arg23[%c0_97, %c8_98] : memref<8x32xf32, #tpu.memory_space<vmem>>, vector<8x8xf32>
      tpu.vector_store %arg23[%c0_97, %c8_98], %194 {strides = array<i32>} : memref<8x32xf32, #tpu.memory_space<vmem>>, vector<8x8xf32>,
      %196 = vector.extract_strided_slice %163 {offsets = [0, 16], sizes = [8, 8], strides = [1, 1]} : vector<8x96xf32> to vector<8x8xf32>
      %197 = vector.extract_strided_slice %163 {offsets = [0, 48], sizes = [8, 8], strides = [1, 1]} : vector<8x96xf32> to vector<8x8xf32>
      %198 = vector.extract_strided_slice %163 {offsets = [0, 80], sizes = [8, 8], strides = [1, 1]} : vector<8x96xf32> to vector<8x8xf32>
      %cst_99 = arith.constant dense<0.000000e+00> : vector<8x8xf32>
      %199 = tpu.matmul %196, %197, %cst_99 {dimension_numbers = #tpu.dot_dimension_numbers<[1], [1], [0], [0], [0, 0, 1, 0], [], []>} : vector<8x8xf32>, vector<8x8xf32>, vector<8x8xf32> -> vector<8x8xf32>
      %cst_100 = arith.constant dense<0xFF800000> : vector<8xf32>
      %200 = vector.multi_reduction <maximumf>, %199, %cst_100 [1] : vector<8x8xf32> to vector<8xf32>
      %201 = vector.shape_cast %200 : vector<8xf32> to vector<8x1xf32>
      %202 = vector.broadcast %201 : vector<8x1xf32> to vector<8x8xf32>
      %203 = arith.subf %199, %202 : vector<8x8xf32>
      %204 = math.exp %203 : vector<8x8xf32>
      %cst_101 = arith.constant dense<0.000000e+00> : vector<8xf32>
      %205 = vector.multi_reduction <add>, %204, %cst_101 [1] : vector<8x8xf32> to vector<8xf32>
      %206 = vector.shape_cast %205 : vector<8xf32> to vector<8x1xf32>
      %207 = tpu.reciprocal %206 {approx = true} : vector<8x1xf32> -> vector<8x1xf32>
      %208 = vector.broadcast %207 : vector<8x1xf32> to vector<8x8xf32>
      %209 = arith.mulf %204, %208 : vector<8x8xf32>
      %cst_102 = arith.constant dense<0.000000e+00> : vector<8x8xf32>
      %210 = tpu.matmul %209, %198, %cst_102 {dimension_numbers = #tpu.dot_dimension_numbers<[1], [0], [0], [1], [0, 0, 1, 1], [], []>} : vector<8x8xf32>, vector<8x8xf32>, vector<8x8xf32> -> vector<8x8xf32>
      %c0_103 = arith.constant 0 : index
      %c16_104 = arith.constant 16 : index
      %211 = vector.load %arg23[%c0_103, %c16_104] : memref<8x32xf32, #tpu.memory_space<vmem>>, vector<8x8xf32>
      tpu.vector_store %arg23[%c0_103, %c16_104], %210 {strides = array<i32>} : memref<8x32xf32, #tpu.memory_space<vmem>>, vector<8x8xf32>,
      %212 = vector.extract_strided_slice %163 {offsets = [0, 24], sizes = [8, 8], strides = [1, 1]} : vector<8x96xf32> to vector<8x8xf32>
      %213 = vector.extract_strided_slice %163 {offsets = [0, 56], sizes = [8, 8], strides = [1, 1]} : vector<8x96xf32> to vector<8x8xf32>
      %214 = vector.extract_strided_slice %163 {offsets = [0, 88], sizes = [8, 8], strides = [1, 1]} : vector<8x96xf32> to vector<8x8xf32>
      %cst_105 = arith.constant dense<0.000000e+00> : vector<8x8xf32>
      %215 = tpu.matmul %212, %213, %cst_105 {dimension_numbers = #tpu.dot_dimension_numbers<[1], [1], [0], [0], [0, 0, 1, 0], [], []>} : vector<8x8xf32>, vector<8x8xf32>, vector<8x8xf32> -> vector<8x8xf32>
      %cst_106 = arith.constant dense<0xFF800000> : vector<8xf32>
      %216 = vector.multi_reduction <maximumf>, %215, %cst_106 [1] : vector<8x8xf32> to vector<8xf32>
      %217 = vector.shape_cast %216 : vector<8xf32> to vector<8x1xf32>
      %218 = vector.broadcast %217 : vector<8x1xf32> to vector<8x8xf32>
      %219 = arith.subf %215, %218 : vector<8x8xf32>
      %220 = math.exp %219 : vector<8x8xf32>
      %cst_107 = arith.constant dense<0.000000e+00> : vector<8xf32>
      %221 = vector.multi_reduction <add>, %220, %cst_107 [1] : vector<8x8xf32> to vector<8xf32>
      %222 = vector.shape_cast %221 : vector<8xf32> to vector<8x1xf32>
      %223 = tpu.reciprocal %222 {approx = true} : vector<8x1xf32> -> vector<8x1xf32>
      %224 = vector.broadcast %223 : vector<8x1xf32> to vector<8x8xf32>
      %225 = arith.mulf %220, %224 : vector<8x8xf32>
      %cst_108 = arith.constant dense<0.000000e+00> : vector<8x8xf32>
      %226 = tpu.matmul %225, %214, %cst_108 {dimension_numbers = #tpu.dot_dimension_numbers<[1], [0], [0], [1], [0, 0, 1, 1], [], []>} : vector<8x8xf32>, vector<8x8xf32>, vector<8x8xf32> -> vector<8x8xf32>
      %c0_109 = arith.constant 0 : index
      %c24_110 = arith.constant 24 : index
      %227 = vector.load %arg23[%c0_109, %c24_110] : memref<8x32xf32, #tpu.memory_space<vmem>>, vector<8x8xf32>
      tpu.vector_store %arg23[%c0_109, %c24_110], %226 {strides = array<i32>} : memref<8x32xf32, #tpu.memory_space<vmem>>, vector<8x8xf32>,
      %c0_111 = arith.constant 0 : index
      %c0_112 = arith.constant 0 : index
      %228 = vector.load %arg23[%c0_111, %c0_112] : memref<8x32xf32, #tpu.memory_space<vmem>>, vector<8x32xf32>
      %cst_113 = arith.constant dense<0.000000e+00> : vector<8x32xf32>
      %229 = tpu.matmul %228, %159, %cst_113 {dimension_numbers = #tpu.dot_dimension_numbers<[1], [0], [0], [1], [0, 0, 1, 1], [], []>} : vector<8x32xf32>, vector<32x32xf32>, vector<8x32xf32> -> vector<8x32xf32>
      %230 = vector.broadcast %160 : vector<1x32xf32> to vector<8x32xf32>
      %231 = arith.addf %229, %230 : vector<8x32xf32>
      %c0_114 = arith.constant 0 : index
      %c0_115 = arith.constant 0 : index
      %232 = vector.load %arg19[%c0_114, %c0_115] : memref<32x256xf32, #tpu.memory_space<vmem>>, vector<32x256xf32>
      %cst_116 = arith.constant dense<0.000000e+00> : vector<8x256xf32>
      %233 = tpu.matmul %231, %232, %cst_116 {dimension_numbers = #tpu.dot_dimension_numbers<[1], [0], [0], [1], [0, 0, 1, 1], [], []>} : vector<8x32xf32>, vector<32x256xf32>, vector<8x256xf32> -> vector<8x256xf32>
      %c0_117 = arith.constant 0 : index
      %c0_118 = arith.constant 0 : index
      %234 = vector.load %arg20[%c0_117, %c0_118] : memref<1x256xf32, #tpu.memory_space<vmem>>, vector<1x256xf32>
      %235 = vector.broadcast %234 : vector<1x256xf32> to vector<8x256xf32>
      %236 = arith.addf %233, %235 : vector<8x256xf32>
      %c0_119 = arith.constant 0 : index
      %c0_120 = arith.constant 0 : index
      %c0_121 = arith.constant 0 : index
      %237 = vector.load %arg21[%c0_119, %c0_120, %c0_121] : memref<1x8x256xf32, #tpu.memory_space<vmem>>, vector<1x8x256xf32>
      %238 = vector.shape_cast %237 : vector<1x8x256xf32> to vector<8x256xf32>
      %239 = vector.shape_cast %236 : vector<8x256xf32> to vector<1x8x256xf32>
      tpu.vector_store %arg21[%c0_119, %c0_120, %c0_121], %239 {strides = array<i32>} : memref<1x8x256xf32, #tpu.memory_space<vmem>>, vector<1x8x256xf32>,
    } else {
    }
    return
  }
  func.func @transform_0(%arg0: i32, %arg1: i32) -> (i32, i32, i32) {
    %c0_i32 = arith.constant 0 : i32
    %c0_i32_0 = arith.constant 0 : i32
    %c0_i32_1 = arith.constant 0 : i32
    return %arg0, %c0_i32, %c0_i32_0 : i32, i32, i32
  }
  func.func @transform_1(%arg0: i32, %arg1: i32) -> (i32, i32, i32) {
    %c0_i32 = arith.constant 0 : i32
    %c0_i32_0 = arith.constant 0 : i32
    %c0_i32_1 = arith.constant 0 : i32
    return %arg1, %c0_i32, %c0_i32_0 : i32, i32, i32
  }
  func.func @transform_2(%arg0: i32, %arg1: i32) -> (i32, i32, i32) {
    %c0_i32 = arith.constant 0 : i32
    %c0_i32_0 = arith.constant 0 : i32
    %c0_i32_1 = arith.constant 0 : i32
    return %arg1, %c0_i32, %c0_i32_0 : i32, i32, i32
  }
  func.func @transform_3(%arg0: i32, %arg1: i32) -> (i32, i32, i32) {
    %c0_i32 = arith.constant 0 : i32
    %c0_i32_0 = arith.constant 0 : i32
    %c0_i32_1 = arith.constant 0 : i32
    return %arg1, %c0_i32, %c0_i32_0 : i32, i32, i32
  }
  func.func @transform_4(%arg0: i32, %arg1: i32) -> (i32, i32, i32) {
    %c0_i32 = arith.constant 0 : i32
    %c0_i32_0 = arith.constant 0 : i32
    %c0_i32_1 = arith.constant 0 : i32
    return %arg1, %c0_i32, %c0_i32_0 : i32, i32, i32
  }
  func.func @transform_5(%arg0: i32, %arg1: i32) -> (i32, i32, i32) {
    %c0_i32 = arith.constant 0 : i32
    %c0_i32_0 = arith.constant 0 : i32
    %c0_i32_1 = arith.constant 0 : i32
    return %arg1, %c0_i32, %c0_i32_0 : i32, i32, i32
  }
  func.func @transform_6(%arg0: i32, %arg1: i32) -> (i32, i32, i32) {
    %c0_i32 = arith.constant 0 : i32
    %c0_i32_0 = arith.constant 0 : i32
    %c0_i32_1 = arith.constant 0 : i32
    return %arg1, %c0_i32, %c0_i32_0 : i32, i32, i32
  }
  func.func @transform_7(%arg0: i32, %arg1: i32) -> (i32, i32, i32) {
    %c0_i32 = arith.constant 0 : i32
    %c0_i32_0 = arith.constant 0 : i32
    %c0_i32_1 = arith.constant 0 : i32
    return %arg1, %c0_i32, %c0_i32_0 : i32, i32, i32
  }
  func.func @transform_8(%arg0: i32, %arg1: i32) -> (i32, i32, i32) {
    %c0_i32 = arith.constant 0 : i32
    %c0_i32_0 = arith.constant 0 : i32
    %c0_i32_1 = arith.constant 0 : i32
    return %arg1, %c0_i32, %c0_i32_0 : i32, i32, i32
  }
  func.func @transform_9(%arg0: i32, %arg1: i32) -> (i32, i32, i32) {
    %c0_i32 = arith.constant 0 : i32
    %c0_i32_0 = arith.constant 0 : i32
    %c0_i32_1 = arith.constant 0 : i32
    return %arg1, %c0_i32, %c0_i32_0 : i32, i32, i32
  }
  func.func @transform_10(%arg0: i32, %arg1: i32) -> (i32, i32, i32) {
    %c0_i32 = arith.constant 0 : i32
    %c0_i32_0 = arith.constant 0 : i32
    %c0_i32_1 = arith.constant 0 : i32
    return %arg1, %c0_i32, %c0_i32_0 : i32, i32, i32
  }
  func.func @transform_11(%arg0: i32, %arg1: i32) -> (i32, i32, i32) {
    %c0_i32 = arith.constant 0 : i32
    %c0_i32_0 = arith.constant 0 : i32
    %c0_i32_1 = arith.constant 0 : i32
    return %arg1, %c0_i32, %c0_i32_0 : i32, i32, i32
  }
  func.func @transform_12(%arg0: i32, %arg1: i32) -> (i32, i32, i32) {
    %c0_i32 = arith.constant 0 : i32
    %c0_i32_0 = arith.constant 0 : i32
    %c0_i32_1 = arith.constant 0 : i32
    return %arg1, %c0_i32, %c0_i32_0 : i32, i32, i32
  }
  func.func @transform_13(%arg0: i32, %arg1: i32) -> (i32, i32) {
    %c0_i32 = arith.constant 0 : i32
    %c0_i32_0 = arith.constant 0 : i32
    %c0_i32_1 = arith.constant 0 : i32
    return %c0_i32, %c0_i32_0 : i32, i32
  }
  func.func @transform_14(%arg0: i32, %arg1: i32) -> (i32, i32) {
    %c0_i32 = arith.constant 0 : i32
    %c0_i32_0 = arith.constant 0 : i32
    %c0_i32_1 = arith.constant 0 : i32
    return %c0_i32, %c0_i32_0 : i32, i32
  }
  func.func @transform_15(%arg0: i32, %arg1: i32) -> (i32, i32) {
    %c0_i32 = arith.constant 0 : i32
    %c0_i32_0 = arith.constant 0 : i32
    %c0_i32_1 = arith.constant 0 : i32
    return %c0_i32, %c0_i32_0 : i32, i32
  }
  func.func @transform_16(%arg0: i32, %arg1: i32) -> (i32, i32) {
    %c0_i32 = arith.constant 0 : i32
    %c0_i32_0 = arith.constant 0 : i32
    %c0_i32_1 = arith.constant 0 : i32
    return %c0_i32, %c0_i32_0 : i32, i32
  }
  func.func @transform_17(%arg0: i32, %arg1: i32) -> (i32, i32) {
    %c0_i32 = arith.constant 0 : i32
    %c0_i32_0 = arith.constant 0 : i32
    %c0_i32_1 = arith.constant 0 : i32
    return %c0_i32, %c0_i32_0 : i32, i32
  }
  func.func @transform_18(%arg0: i32, %arg1: i32) -> (i32, i32) {
    %c0_i32 = arith.constant 0 : i32
    %c0_i32_0 = arith.constant 0 : i32
    %c0_i32_1 = arith.constant 0 : i32
    return %c0_i32, %c0_i32_0 : i32, i32
  }
  func.func @transform_19(%arg0: i32, %arg1: i32) -> (i32, i32, i32) {
    %c0_i32 = arith.constant 0 : i32
    %c0_i32_0 = arith.constant 0 : i32
    %c0_i32_1 = arith.constant 0 : i32
    return %arg0, %c0_i32, %c0_i32_0 : i32, i32, i32
  }
}

</mosaic_0001>

<bundles_post_ra>
// kernel: tpu_custom_call.1
= control target key start
LH: loop header
LB: loop body
LE: loop exit
PB: predicated region body
PF: predicated region fallthrough
CT: control target
= control target key end

     0   :  { %s5553_s0 = inlined_call_operand.hbm [shape: f32[2,8,32], index: 0, kind: input, shape index: {}]   ;;  %s5554_s1 = inlined_call_operand.vmem [shape: f32[2,32,96], index: 1, kind: input, shape index: {}]   ;;  %s5555_s2 = inlined_call_operand.hbm [shape: f32[2,1,96], index: 2, kind: input, shape index: {}]   ;;  %s5556_s3 = inlined_call_operand.vmem [shape: f32[2,32,32], index: 3, kind: input, shape index: {}]   ;;  %s5557_s4 = inlined_call_operand.hbm [shape: f32[2,1,32], index: 4, kind: input, shape index: {}]   ;;  %s5558_s5 = inlined_call_operand.hbm [shape: f32[2,1,32], index: 5, kind: input, shape index: {}]   ;;  %s5559_s6 = inlined_call_operand.hbm [shape: f32[2,1,32], index: 6, kind: input, shape index: {}]   ;;  %s5560_s7 = inlined_call_operand.vmem [shape: f32[2,32,64], index: 7, kind: input, shape index: {}]   ;;  %s5561_s8 = inlined_call_operand.hbm [shape: f32[2,1,64], index: 8, kind: input, shape index: {}]   ;;  %s5562_s9 = inlined_call_operand.vmem [shape: f32[2,64,32], index: 9, kind: input, shape index: {}]   ;;  %s5563_s10 = inlined_call_operand.hbm [shape: f32[2,1,32], index: 10, kind: input, shape index: {}]   ;;  %s5564_s11 = inlined_call_operand.hbm [shape: f32[2,1,32], index: 11, kind: input, shape index: {}]   ;;  %s5565_s12 = inlined_call_operand.hbm [shape: f32[2,1,32], index: 12, kind: input, shape index: {}]   ;;  %s5566_s13 = inlined_call_operand.hbm [shape: f32[32,96], index: 13, kind: input, shape index: {}]   ;;  %s5567_s14 = inlined_call_operand.hbm [shape: f32[1,96], index: 14, kind: input, shape index: {}]   ;;  %s5568_s15 = inlined_call_operand.hbm [shape: f32[32,32], index: 15, kind: input, shape index: {}]   ;;  %s5569_s16 = inlined_call_operand.hbm [shape: f32[1,32], index: 16, kind: input, shape index: {}]   ;;  %s5570_s17 = inlined_call_operand.vmem [shape: f32[32,256], index: 17, kind: input, shape index: {}]   ;;  %s5571_s18 = inlined_call_operand.vmem [shape: f32[1,256], index: 18, kind: input, shape index: {}]   ;;  %s5572_s19 = inlined_call_operand.hbm [shape: f32[2,8,256], index: 19, kind: output, shape index: {}]  }
   0x1   :  { %5611 = sst [smem:[#allocation46_spill]] %s5553_s0 }
   0x2   :  { %5612 = sst [smem:[#allocation47_spill]] %s5554_s1 }
   0x3   :  { %5613 = sst [smem:[#allocation48_spill]] %s5555_s2 }
   0x4   :  { %5614 = sst [smem:[#allocation49_spill]] %s5556_s3 }
   0x5   :  { %5615 = sst [smem:[#allocation50_spill]] %s5557_s4 }
   0x6   :  { %5616 = sst [smem:[#allocation51_spill]] %s5558_s5 }
   0x7   :  { %5617 = sst [smem:[#allocation52_spill]] %s5559_s6 }
   0x8   :  { %5618 = sst [smem:[#allocation53_spill]] %s5560_s7 }
   0x9   :  { %5619 = sst [smem:[#allocation54_spill]] %s5561_s8 }
   0xa   :  { %5620 = sst [smem:[#allocation55_spill]] %s5562_s9 }
   0xb   :  { %5621 = sst [smem:[#allocation56_spill]] %s5563_s10 }
   0xc   :  { %5622 = sst [smem:[#allocation57_spill]] %s5564_s11 }
   0xd   :  { %5623 = sst [smem:[#allocation58_spill]] %s5565_s12 }
   0xe   :  { %5624 = sst [smem:[#allocation59_spill]] %s5566_s13 }
   0xf   :  { %5625 = sst [smem:[#allocation60_spill]] %s5567_s14 }
  0x10   :  { %5626 = sst [smem:[#allocation61_spill]] %s5568_s15 }
  0x11   :  { %5627 = sst [smem:[#allocation62_spill]] %s5569_s16 }
  0x12   :  { %5628 = sst [smem:[#allocation63_spill]] %s5570_s17 }
  0x13   :  { %5629 = sst [smem:[#allocation64_spill]] %s5571_s18 }
  0x14   :  { %5630 = sst [smem:[#allocation65_spill]] %s5572_s19 }
  0x15   :  { %24 = vsyncpa [#allocation5], 0 }
  0x16   :  { %26 = vsyncpa [#allocation5 + $0x1], 0 }
  0x17   :  { %27 = vsyncpa [#allocation8], 0 }
  0x18   :  { %29 = vsyncpa [#allocation8 + $0x1], 0 }
  0x19   :  { %30 = vsyncpa [#allocation11], 0 }
  0x1a   :  { %32 = vsyncpa [#allocation11 + $0x1], 0 }
  0x1b   :  { %33 = vsyncpa [#allocation14], 0 }
  0x1c   :  { %35 = vsyncpa [#allocation14 + $0x1], 0 }
  0x1d   :  { %36 = vsyncpa [#allocation17], 0 }
  0x1e   :  { %38 = vsyncpa [#allocation17 + $0x1], 0 }
  0x1f   :  { %39 = vsyncpa [#allocation20], 0 }
  0x20   :  { %40 = vsyncpa [#allocation23], 0 }
  0x21   :  { %41 = vsyncpa [#allocation6], 0 }
  0x22   :  { %43 = vsyncpa [#allocation6 + $0x1], 0  ;;  %s4682_s0 = smov 0   ;;  %s4684_s30 = smov 0  }
  0x23   :  { %s4686_s20 = smov 0   ;;  %s4688_s21 = smov 0  }
  0x24   :  { %s4690_s1 = smov 0   ;;  %s4692_s22 = smov 0  }
  0x25   :  { %s4694_s2 = smov 0   ;;  %s4696_s23 = smov 0  }
  0x26   :  { %s4698_s24 = smov 0   ;;  %s4700_s25 = smov 0  }
  0x27   :  { %s4702_s3 = smov 0  }
  0x28 LB: > { %5631 = sst [smem:[#allocation34_spill]] %s4494_s30  ;;  %s4736_s26 = sadd.s32 4294967295, %s4530_s3   ;;  %s4530_s3 = sphi %s4702_s3, %s49_s3   ;;  %s4526_s25 = sphi %s4700_s25, %s5728_s25   ;;  %s4522_s24 = sphi %s4698_s24, %s5727_s24   ;;  %s4518_s23 = sphi %s4696_s23, %s5726_s23   ;;  %s4514_s2 = sphi %s4694_s2, %s5725_s2   ;;  %s4510_s22 = sphi %s4692_s22, %s5724_s22   ;;  %s4506_s1 = sphi %s4690_s1, %s5732_s1   ;;  %s4502_s21 = sphi %s4688_s21, %s5731_s21   ;;  %s4498_s20 = sphi %s4686_s20, %s5730_s20   ;;  %s4494_s30 = sphi %s4684_s30, %s5729_s30   ;;  %s4490_s0 = sphi %s4682_s0, %s5721_s0  }
  0x29   : > { %5632 = sst [smem:[#allocation35_spill]] %s4510_s22  ;;  %p133_p0 = scmp.ne.s32.totalorder %s4494_s30, %s4490_s0 }
  0x2a   : > { %5633 = sst [smem:[#allocation36_spill]] %s4514_s2  ;;  %p5581_p1 = scmp.eq.s32.totalorder %s4736_s26, 0 }
  0x2b   : > { %5634 = sst [smem:[#allocation37_spill]] %s4518_s23  ;;  %p3393_p2 = scmp.ge.s32.totalorder %s4530_s3, 1 }
  0x2c   : > { %5635 = sst [smem:[#allocation38_spill]] %s4522_s24  ;;  %p556_p3 = scmp.lt.s32.totalorder %s4530_s3, 5 }
  0x2d   : > { %5636 = sst [smem:[#allocation39_spill]] %s4526_s25  ;;  %p4744_p4 = por %p133_p0, %p5581_p1 }
  0x2e   : > { %p4748_p5 = pnand %p3393_p2, %p556_p3  ;;  %s4532_s29 = smov [#allocation19]  }
  0x2f   : > { %s5637_s27 = scalar_select %p4744_p4, 1, 0 }
  0x30   : > { %s5639_s28 = scalar_select %p4748_p5, 1, 0 }
  0x31   : > { %5638 = sst [smem:[#allocation40_spill]] %s5637_s27  ;;  %s568_s19 = sshll.u32 %s4532_s29, 4  ;;  %s569_s19 = int_to_ptr.vmem [resolvable:$true] %s568_s19 }
  0x32   : > { %5640 = sst [smem:[#allocation41_spill]] %s5639_s28  ;;  %p3783_p6 = pneg %p4748_p5 }
  0x33   : > { %s4533_s23 = smov [#allocation22]   ;;  %s5642_s13 = sld [smem:[#allocation59_spill]] }
  0x34   : > { %p4756_p7 = pnand %p3783_p6, %p5581_p1  ;;  %s592_s18 = sshll.u32 %s4533_s23, 4  ;;  %s4760_s18 = int_to_ptr.vmem [resolvable:$true] %s592_s18 }
  0x36   : > { %s5641_s0 = scalar_select %p4756_p7, 1, 0 }
  0x37   : > { %p4770_p9 = pneg %p4756_p7 }
  0x39   : > { %s4002_s7 = scalar_lea.hbm %s5642_s13, 512 }
  0x3a   : > { %p4003_p8 = scmp.ne.s32.totalorder %s5642_s13, %s4002_s7  ;;  %p4009_p12 = scmp.lt.u32.totalorder %s4002_s7, %s5642_s13 }
  0x3b   : > { %s5643_s29 = scalar_select %p4770_p9, 1, 0 }
  0x3c   : > { %p4005_p10 = pnand %p4770_p9, %p4003_p8 }
  0x3e   : > { %p4006_p11 = pneg %p4005_p10 }
  0x40   : > { %p4011_p13 = pnand %p4009_p12, %p4006_p11 }
  0x42   : > { %4014 = shalt.err (!%p4011_p13)
}
  0x43   : > { %s4015_s9 = scalar_lea.vmem %s569_s19, 512  ;;  %p4023_p6 = scmp.lt.s32.totalorder %s569_s19, %s569_s19 }
  0x44   : > { %p4016_p0 = scmp.ne.s32.totalorder %s569_s19, %s4015_s9  ;;  %p4024_p1 = scmp.lt.s32.totalorder %s4015_s9, %s4015_s9 }
  0x46   : > { %p4018_p2 = pnand %p4016_p0, %p4770_p9  ;;  %p4025_p4 = por %p4024_p1, %p4023_p6 }
  0x48   : > { %p4019_p3 = pneg %p4018_p2 }
  0x4a   : > { %p4026_p5 = pnand %p4025_p4, %p4019_p3 }
  0x4c   : > { %4029 = shalt.err (!%p4026_p5)
}
  0x4d   : > { %s4534_s17 = smov 128   ;;  %s4535_s2 = smov 8  }
  0x4e   : > { %3786 = dma.hbm_to_vmem [thread:$0]  (!%p4756_p7), %s5642_s13, 512, %s569_s19, [#allocation20], %s4534_s17, %s4534_s17, %s4535_s2  }
  0x4f   : > { %s5644_s15 = sld [smem:[#allocation61_spill]] }
  0x55   : > { %s4030_s12 = scalar_lea.hbm %s5644_s15, 512 }
  0x56   : > { %p4031_p8 = scmp.ne.s32.totalorder %s5644_s15, %s4030_s12  ;;  %p4037_p5 = scmp.lt.u32.totalorder %s4030_s12, %s5644_s15 }
  0x58   : > { %p4033_p1 = pnand %p4031_p8, %p4770_p9 }
  0x5a   : > { %p4034_p4 = pneg %p4033_p1 }
  0x5c   : > { %p4039_p10 = pnand %p4037_p5, %p4034_p4 }
  0x5e   : > { %4042 = shalt.err (!%p4039_p10)
}
  0x5f   : > { %s4043_s19 = scalar_lea.vmem %s4760_s18, 512  ;;  %p4051_p0 = scmp.lt.s32.totalorder %s4760_s18, %s4760_s18 }
  0x60   : > { %p4044_p11 = scmp.ne.s32.totalorder %s4760_s18, %s4043_s19  ;;  %p4052_p2 = scmp.lt.s32.totalorder %s4043_s19, %s4043_s19 }
  0x62   : > { %p4046_p12 = pnand %p4044_p11, %p4770_p9  ;;  %p4053_p3 = por %p4052_p2, %p4051_p0 }
  0x64   : > { %p4047_p13 = pneg %p4046_p12 }
  0x66   : > { %p4054_p6 = pnand %p4053_p3, %p4047_p13 }
  0x68   : > { %4057 = shalt.err (!%p4054_p6)
}
  0x69   : > { %3792 = dma.hbm_to_vmem [thread:$0]  (!%p4756_p7), %s5644_s15, 512, %s4760_s18, [#allocation23], %s4534_s17, %s4534_s17, %s4535_s2  }
  0x6a   : > { %p5589_p8 = scmp.eq.s32.totalorder %s4530_s3, 0  ;;  %p127_p1 = scmp.ne.s32.totalorder %s4498_s20, %s4494_s30 }
  0x6b   : > { %p5588_p4 = scmp.lt.s32.totalorder %s4530_s3, 4  ;;  %s4814_s10 = sand.u32 1, %s4530_s3  }
  0x6c   : > { %p129_p5 = por %p127_p1, %p5589_p8  ;;  %s4819_s12 = sand.u32 1, %s4498_s20  }
  0x6d   : > { %s4822_s27 = sshll.u32 %s4522_s24, 4  ;;  %s5645_s23 = sld [smem:[#allocation48_spill]] }
  0x6e   : > { %s652_s18 = scalar_lea.vmem [#allocation7], %s4819_s12  ;;  %p4833_p10 = pnand %p5588_p4, %p129_p5 }
  0x6f   : > { %s659_s17 = sshll.u32 %s652_s18, 4  ;;  %s4837_s17 = int_to_ptr.vmem [resolvable:$true] %s659_s17 }
  0x70   : > { %s5647_s2 = scalar_select %p4833_p10, 1, 0 }
  0x71   : > { %p4844_p12 = pneg %p4833_p10 }
  0x73   : > { %s5646_s9 = smov %s5645_s23  ;;  %s4828_s19 = scalar_lea.hbm %s5645_s23, %s4822_s27 }
  0x74   : > { %s4058_s6 = scalar_lea.hbm %s4828_s19, 16  ;;  %s4063_s18 = scalar_lea.hbm %s5646_s9, 32 }
  0x75   : > { %p4059_p11 = scmp.ne.s32.totalorder %s4828_s19, %s4058_s6  ;;  %p4064_p2 = scmp.lt.u32.totalorder %s4828_s19, %s5646_s9 }
  0x76   : > { %s5648_s7 = scalar_select %p4844_p12, 1, 0 }
  0x77   : > { %p4061_p13 = pnand %p4844_p12, %p4059_p11  ;;  %p4065_p3 = scmp.lt.u32.totalorder %s4063_s18, %s4058_s6 }
  0x78   : > { %p4067_p1 = scmp.lt.u32.totalorder %s4058_s6, %s4828_s19 }
  0x79   : > { %p4062_p0 = pneg %p4061_p13  ;;  %p4066_p6 = por %p4065_p3, %p4064_p2 }
  0x7b   : > { %p4068_p5 = por %p4067_p1, %p4066_p6 }
  0x7d   : > { %p4069_p4 = pnand %p4068_p5, %p4062_p0 }
  0x7f   : > { %4072 = shalt.err (!%p4069_p4)
}
  0x80   : > { %s4073_s4 = scalar_lea.vmem %s4837_s17, 16  ;;  %s4536_s28 = smov [#allocation7]  }
  0x81   : > { %p4074_p11 = scmp.ne.s32.totalorder %s4837_s17, %s4073_s4  ;;  %s4078_s23 = sshll.u32 %s4536_s28, 4  ;;  %s4079_s23 = int_to_ptr.vmem [resolvable:$false] %s4078_s23 }
  0x82   : > { %s4080_s13 = scalar_lea.vmem %s4079_s23, 32  ;;  %p4081_p7 = scmp.lt.s32.totalorder %s4837_s17, %s4079_s23 }
  0x83   : > { %p4076_p13 = pnand %p4074_p11, %p4844_p12  ;;  %p4082_p9 = scmp.lt.s32.totalorder %s4080_s13, %s4073_s4 }
  0x85   : > { %p4077_p8 = pneg %p4076_p13  ;;  %p4083_p2 = por %p4082_p9, %p4081_p7 }
  0x87   : > { %p4084_p3 = pnand %p4083_p2, %p4077_p8 }
  0x89   : > { %4087 = shalt.err (!%p4084_p3)
}
  0x8a   : > { %s5649_s15 = scalar_lea.sflag [#allocation8], %s4814_s10  ;;  %s5650_s5 = sld [smem:[#allocation51_spill]] }
  0x8b   : > { %3802 = dma.hbm_to_vmem [thread:$0]  (!%p4833_p10), %s4828_s19, 16, %s4837_s17, %s5649_s15  }
  0x8c   : > { %s694_s4 = scalar_lea.vmem [#allocation10], %s4819_s12 }
  0x8d   : > { %s701_s23 = sshll.u32 %s694_s4, 4  ;;  %s702_s23 = int_to_ptr.vmem [resolvable:$true] %s701_s23 }
  0x90   : > { %s4873_s28 = scalar_lea.hbm %s5650_s5, %s4822_s27  ;;  %s4093_s17 = scalar_lea.hbm %s5650_s5, 32 }
  0x91   : > { %s4088_s9 = scalar_lea.hbm %s4873_s28, 16  ;;  %p4094_p4 = scmp.lt.u32.totalorder %s4873_s28, %s5650_s5 }
  0x92   : > { %p4089_p7 = scmp.ne.s32.totalorder %s4873_s28, %s4088_s9  ;;  %p4095_p0 = scmp.lt.u32.totalorder %s4093_s17, %s4088_s9 }
  0x93   : > { %p4097_p1 = scmp.lt.u32.totalorder %s4088_s9, %s4873_s28 }
  0x94   : > { %p4091_p9 = pnand %p4089_p7, %p4844_p12  ;;  %p4096_p6 = por %p4095_p0, %p4094_p4 }
  0x96   : > { %p4092_p8 = pneg %p4091_p9  ;;  %p4098_p5 = por %p4097_p1, %p4096_p6 }
  0x98   : > { %p4099_p11 = pnand %p4098_p5, %p4092_p8 }
  0x9a   : > { %4102 = shalt.err (!%p4099_p11)
}
  0x9b   : > { %s4103_s18 = scalar_lea.vmem %s702_s23, 16  ;;  %s4537_s4 = smov [#allocation10]  }
  0x9c   : > { %p4104_p13 = scmp.ne.s32.totalorder %s702_s23, %s4103_s18  ;;  %s4108_s13 = sshll.u32 %s4537_s4, 4  ;;  %s4109_s13 = int_to_ptr.vmem [resolvable:$false] %s4108_s13 }
  0x9d   : > { %s4110_s30 = scalar_lea.vmem %s4109_s13, 32  ;;  %p4111_p7 = scmp.lt.s32.totalorder %s702_s23, %s4109_s13 }
  0x9e   : > { %p4106_p2 = pnand %p4104_p13, %p4844_p12  ;;  %p4112_p9 = scmp.lt.s32.totalorder %s4110_s30, %s4103_s18 }
  0xa0   : > { %p4107_p3 = pneg %p4106_p2  ;;  %p4113_p10 = por %p4112_p9, %p4111_p7 }
  0xa2   : > { %p4114_p0 = pnand %p4113_p10, %p4107_p3 }
  0xa4   : > { %4117 = shalt.err (!%p4114_p0)
}
  0xa5   : > { %p5651_p4 = scmp.ne.s32.totalorder %s5647_s2, 0  ;;  %s5652_s9 = scalar_lea.sflag [#allocation11], %s4814_s10 }
  0xa6   : > { %s5653_s8 = sld [smem:[#allocation54_spill]]  ;;  %s736_s13 = scalar_lea.vmem [#allocation13], %s4819_s12 }
  0xa7   : > { %3808 = dma.hbm_to_vmem [thread:$0]  (!%p5651_p4), %s4873_s28, 16, %s702_s23, %s5652_s9  }
  0xa8   : > { %s743_s6 = sshll.u32 %s736_s13, 4  ;;  %s744_s6 = int_to_ptr.vmem [resolvable:$true] %s743_s6 }
  0xac   : > { %s4900_s15 = scalar_lea.hbm %s5653_s8, %s4822_s27  ;;  %s4123_s23 = scalar_lea.hbm %s5653_s8, 32 }
  0xad   : > { %s4118_s4 = scalar_lea.hbm %s4900_s15, 16  ;;  %p4124_p1 = scmp.lt.u32.totalorder %s4900_s15, %s5653_s8 }
  0xae   : > { %p4119_p10 = scmp.ne.s32.totalorder %s4900_s15, %s4118_s4  ;;  %p4125_p5 = scmp.lt.u32.totalorder %s4123_s23, %s4118_s4 }
  0xaf   : > { %p4127_p13 = scmp.lt.u32.totalorder %s4118_s4, %s4900_s15 }
  0xb0   : > { %p4121_p8 = pnand %p4119_p10, %p4844_p12  ;;  %p4126_p11 = por %p4125_p5, %p4124_p1 }
  0xb2   : > { %p4122_p6 = pneg %p4121_p8  ;;  %p4128_p2 = por %p4127_p13, %p4126_p11 }
  0xb4   : > { %p4129_p3 = pnand %p4128_p2, %p4122_p6 }
  0xb6   : > { %4132 = shalt.err (!%p4129_p3)
}
  0xb7   : > { %s4133_s17 = scalar_lea.vmem %s744_s6, 16  ;;  %s4538_s13 = smov [#allocation13]  }
  0xb8   : > { %p4134_p7 = scmp.ne.s32.totalorder %s744_s6, %s4133_s17  ;;  %s4138_s18 = sshll.u32 %s4538_s13, 4  ;;  %s4139_s18 = int_to_ptr.vmem [resolvable:$false] %s4138_s18 }
  0xb9   : > { %s4140_s30 = scalar_lea.vmem %s4139_s18, 32  ;;  %p4141_p10 = scmp.lt.s32.totalorder %s744_s6, %s4139_s18 }
  0xba   : > { %p4136_p9 = pnand %p4134_p7, %p4844_p12  ;;  %p4142_p8 = scmp.lt.s32.totalorder %s4140_s30, %s4133_s17 }
  0xbc   : > { %p4137_p0 = pneg %p4136_p9  ;;  %p4143_p4 = por %p4142_p8, %p4141_p10 }
  0xbe   : > { %p4144_p1 = pnand %p4143_p4, %p4137_p0 }
  0xc0   : > { %4147 = shalt.err (!%p4144_p1)
}
  0xc1   : > { %p5654_p5 = scmp.ne.s32.totalorder %s5647_s2, 0  ;;  %s5655_s4 = scalar_lea.sflag [#allocation14], %s4814_s10 }
  0xc2   : > { %s5656_s11 = sld [smem:[#allocation57_spill]]  ;;  %s778_s18 = scalar_lea.vmem [#allocation16], %s4819_s12 }
  0xc3   : > { %3814 = dma.hbm_to_vmem [thread:$0]  (!%p5654_p5), %s4900_s15, 16, %s744_s6, %s5655_s4  }
  0xc4   : > { %s785_s19 = sshll.u32 %s778_s18, 4  ;;  %s786_s19 = int_to_ptr.vmem [resolvable:$true] %s785_s19 }
  0xc8   : > { %s4927_s9 = scalar_lea.hbm %s5656_s11, %s4822_s27  ;;  %s4153_s6 = scalar_lea.hbm %s5656_s11, 32 }
  0xc9   : > { %s4148_s13 = scalar_lea.hbm %s4927_s9, 16  ;;  %p4154_p13 = scmp.lt.u32.totalorder %s4927_s9, %s5656_s11 }
  0xca   : > { %p4149_p4 = scmp.ne.s32.totalorder %s4927_s9, %s4148_s13  ;;  %p4155_p2 = scmp.lt.u32.totalorder %s4153_s6, %s4148_s13 }
  0xcb   : > { %p4157_p7 = scmp.lt.u32.totalorder %s4148_s13, %s4927_s9 }
  0xcc   : > { %p4151_p6 = pnand %p4149_p4, %p4844_p12  ;;  %p4156_p3 = por %p4155_p2, %p4154_p13 }
  0xce   : > { %p4152_p11 = pneg %p4151_p6  ;;  %p4158_p9 = por %p4157_p7, %p4156_p3 }
  0xd0   : > { %p4159_p0 = pnand %p4158_p9, %p4152_p11 }
  0xd2   : > { %4162 = shalt.err (!%p4159_p0)
}
  0xd3   : > { %s4163_s23 = scalar_lea.vmem %s786_s19, 16  ;;  %s4539_s18 = smov [#allocation16]  }
  0xd4   : > { %p4164_p10 = scmp.ne.s32.totalorder %s786_s19, %s4163_s23  ;;  %s4168_s17 = sshll.u32 %s4539_s18, 4  ;;  %s4169_s17 = int_to_ptr.vmem [resolvable:$false] %s4168_s17 }
  0xd5   : > { %s4170_s30 = scalar_lea.vmem %s4169_s17, 32  ;;  %p4171_p4 = scmp.lt.s32.totalorder %s786_s19, %s4169_s17 }
  0xd6   : > { %p4166_p8 = pnand %p4164_p10, %p4844_p12  ;;  %p4172_p6 = scmp.lt.s32.totalorder %s4170_s30, %s4163_s23 }
  0xd8   : > { %p4167_p1 = pneg %p4166_p8  ;;  %p4173_p5 = por %p4172_p6, %p4171_p4 }
  0xda   : > { %p4174_p2 = pnand %p4173_p5, %p4167_p1 }
  0xdc   : > { %4177 = shalt.err (!%p4174_p2)
}
  0xdd   : > { %p5657_p13 = scmp.ne.s32.totalorder %s5647_s2, 0  ;;  %s5658_s13 = scalar_lea.sflag [#allocation17], %s4814_s10 }
  0xde   : > { %s4540_s15 = smov [#allocation21]   ;;  %s4541_s4 = smov [#allocation24]  }
  0xdf   : > { %3820 = dma.hbm_to_vmem [thread:$0]  (!%p5657_p13), %s4927_s9, 16, %s786_s19, %s5658_s13  }
  0xe0   : > { %s582_s6 = sshll.u32 %s4540_s15, 4  ;;  %s606_s28 = sshll.u32 %s4541_s4, 4  ;;  %s583_s6 = int_to_ptr.vmem [resolvable:$true] %s582_s6  ;;  %s607_s28 = int_to_ptr.vmem [resolvable:$true] %s606_s28 }
  0xe1   : > { %s5659_s14 = sld [smem:[#allocation60_spill]]  ;;  %p5660_p11 = scmp.ne.s32.totalorder %s5643_s29, 0 }
  0xe7   : > { %s4178_s17 = scalar_lea.hbm %s5659_s14, 16 }
  0xe8   : > { %p4179_p5 = scmp.ne.s32.totalorder %s5659_s14, %s4178_s17  ;;  %p4185_p9 = scmp.lt.u32.totalorder %s4178_s17, %s5659_s14 }
  0xea   : > { %p4181_p3 = pnand %p4179_p5, %p5660_p11 }
  0xec   : > { %p4182_p7 = pneg %p4181_p3 }
  0xee   : > { %p4187_p0 = pnand %p4185_p9, %p4182_p7 }
  0xf0   : > { %4190 = shalt.err (!%p4187_p0)
}
  0xf1   : > { %s4191_s9 = scalar_lea.vmem %s583_s6, 16  ;;  %s4198_s5 = scalar_lea.vmem %s583_s6, 32 }
  0xf2   : > { %p4192_p10 = scmp.ne.s32.totalorder %s583_s6, %s4191_s9  ;;  %p4199_p4 = scmp.lt.s32.totalorder %s583_s6, %s583_s6 }
  0xf3   : > { %p4200_p6 = scmp.lt.s32.totalorder %s4198_s5, %s4191_s9 }
  0xf4   : > { %p4194_p8 = pnand %p4192_p10, %p5660_p11 }
  0xf5   : > { %p4201_p2 = por %p4200_p6, %p4199_p4 }
  0xf6   : > { %p4195_p1 = pneg %p4194_p8 }
  0xf8   : > { %p4202_p13 = pnand %p4201_p2, %p4195_p1 }
  0xfa   : > { %4205 = shalt.err (!%p4202_p13)
}
  0xfb   : > { %p5661_p5 = scmp.ne.s32.totalorder %s5641_s0, 0  ;;  %s5662_s16 = sld [smem:[#allocation62_spill]] }
  0xfd   : > { %3789 = dma.hbm_to_vmem [thread:$0]  (!%p5661_p5), %s5659_s14, 16, %s583_s6, [#allocation20]  }
 0x101   : > { %s4206_s15 = scalar_lea.hbm %s5662_s16, 16 }
 0x102   : > { %p4207_p3 = scmp.ne.s32.totalorder %s5662_s16, %s4206_s15  ;;  %p4213_p13 = scmp.lt.u32.totalorder %s4206_s15, %s5662_s16 }
 0x104   : > { %p4209_p7 = pnand %p4207_p3, %p5660_p11 }
 0x106   : > { %p4210_p9 = pneg %p4209_p7 }
 0x108   : > { %p4215_p0 = pnand %p4213_p13, %p4210_p9 }
 0x10a   : > { %4218 = shalt.err (!%p4215_p0)
}
 0x10b   : > { %s4219_s30 = scalar_lea.vmem %s607_s28, 16  ;;  %s4226_s6 = scalar_lea.vmem %s607_s28, 32 }
 0x10c   : > { %p4220_p10 = scmp.ne.s32.totalorder %s607_s28, %s4219_s30  ;;  %p4227_p4 = scmp.lt.s32.totalorder %s607_s28, %s607_s28 }
 0x10d   : > { %p4228_p6 = scmp.lt.s32.totalorder %s4226_s6, %s4219_s30 }
 0x10e   : > { %p4222_p8 = pnand %p4220_p10, %p5660_p11 }
 0x10f   : > { %p4229_p2 = por %p4228_p6, %p4227_p4 }
 0x110   : > { %p4223_p1 = pneg %p4222_p8 }
 0x112   : > { %p4230_p12 = pnand %p4229_p2, %p4223_p1 }
 0x114   : > { %4233 = shalt.err (!%p4230_p12)
}
 0x115   : > { %3795 = dma.hbm_to_vmem [thread:$0]  (!%p5661_p5), %s5662_s16, 16, %s607_s28, [#allocation23]  }
 0x116   : > { %s3392_s0 = sadd.s32 4294967294, %s4530_s3   ;;  %s58_s29 = sadd.s32 1, %s4522_s24 }
 0x117   : > { %s61_s19 = sadd.s32 1, %s4526_s25  ;;  %p59_p12 = scmp.ge.s32.totalorder %s58_s29, 2 }
 0x118   : > { %s68_s13 = sadd.s32 1, %s4510_s22  ;;  %p75_p11 = scmp.ne.s32.totalorder %s4510_s22, %s4506_s1 }
 0x119   : > { %p81_p3 = scmp.ne.s32.totalorder %s4506_s1, %s4502_s21  ;;  %s5734_s29 = smov (%p59_p12, %s58_s29), 0 }
 0x11a   : > { %5663 = sst [smem:[#allocation42_spill]] %s5734_s29  ;;  %s5736_s19 = smov (!%p59_p12, %s61_s19), %s4526_s25 }
 0x11b   : > { %p5664_p5 = scmp.eq.s32.totalorder %s4530_s3, 0  ;;  %p5666_p9 = scmp.eq.s32.totalorder %s4736_s26, 0 }
 0x11c   : > { %p63_p0 = scmp.ge.s32.totalorder %s5736_s19, 2  ;;  %s117_s11 = ssub.s32 %s4522_s24, %s5734_s29 }
 0x11d   : > { %p5002_p7 = por %p5664_p5, %p75_p11  ;;  %p5011_p13 = por %p5666_p9, %p81_p3 }
 0x11e   : > { %p118_p10 = scmp.eq.s32.totalorder %s117_s11, 0  ;;  %s120_s15 = sadd.s32 1, %s4498_s20 }
 0x11f   : > { %s5667_s8 = scalar_select %p5011_p13, 1, 0 }
 0x120   : > { %s5738_s19 = smov (%p63_p0, %s5736_s19), 0  ;;  %p543_p8 = scmp.eq.s32.totalorder %s4736_s26, 3 }
 0x121   : > { %5668 = sst [smem:[#allocation43_spill]] %s5738_s19  ;;  %s65_s18 = ssub.s32 %s4526_s25, %s5738_s19 }
 0x122   : > { %s5021_s4 = scalar_select %p118_p10, %s4498_s20, %s120_s15  }
 0x123   : > { %p66_p1 = scmp.eq.s32.totalorder %s65_s18, 0  ;;  %p549_p4 = scmp.eq.s32.totalorder %s3392_s0, 3 }
 0x124   : > { %5669 = sst [smem:[#allocation44_spill]] %s5021_s4  ;;  %p5029_p6 = por %p543_p8, %p75_p11 }
 0x125   : > { %s623_s23 = sand.u32 1, %s4510_s22   ;;  %p5040_p2 = por %p549_p4, %p81_p3 }
 0x126   : > { %s5670_s17 = scalar_select %p5029_p6, 1, 0 }
 0x127   : > { %s5035_s30 = scalar_select %p66_p1, %s4510_s22, %s68_s13  }
 0x128   : > { %s5672_s6 = scalar_select %p5040_p2, 1, 0 }
 0x129   : > { %5671 = sst [smem:[#allocation45_spill]] %s5035_s30  ;;  %s3399_s9 = sshll.u32 %s623_s23, 3 }
 0x12a   : > { %s3400_s5 = sshll.u32 %s4526_s25, 7  ;;  %s5673_s14 = sld [smem:[#allocation46_spill]] }
 0x12b   : > { %s627_s0 = scalar_lea.vmem [#allocation4], %s3399_s9  ;;  %p5674_p12 = scmp.lt.s32.totalorder %s4530_s3, 4 }
 0x12c   : > { %s634_s16 = sshll.u32 %s627_s0, 4  ;;  %s624_s29 = scalar_lea.sflag [#allocation5], %s623_s23  ;;  %s5058_s16 = int_to_ptr.vmem [resolvable:$true] %s634_s16 }
 0x12d   : > { %p5054_p11 = pnand %p5674_p12, %p5002_p7 }
 0x12f   : > { %p4236_p5 = pneg %p5054_p11 }
 0x130   : > { %s5048_s18 = scalar_lea.hbm %s5673_s14, %s3400_s5  ;;  %s5676_s5 = sld [smem:[#allocation50_spill]] }
 0x131   : > { %s4234_s25 = scalar_lea.hbm %s5048_s18, 128  ;;  %s4239_s0 = scalar_lea.hbm %s5673_s14, 256 }
 0x132   : > { %p4235_p3 = scmp.ne.s32.totalorder %s5048_s18, %s4234_s25  ;;  %p4240_p0 = scmp.lt.u32.totalorder %s5048_s18, %s5673_s14 }
 0x133   : > { %p4241_p10 = scmp.lt.u32.totalorder %s4239_s0, %s4234_s25  ;;  %p4243_p1 = scmp.lt.u32.totalorder %s4234_s25, %s5048_s18 }
 0x134   : > { %p4237_p7 = pnand %p4236_p5, %p4235_p3 }
 0x135   : > { %p4242_p8 = por %p4241_p10, %p4240_p0 }
 0x136   : > { %s5064_s15 = scalar_lea.hbm %s5676_s5, %s4822_s27  ;;  %p4238_p9 = pneg %p4237_p7 }
 0x137   : > { %p4244_p4 = por %p4243_p1, %p4242_p8 }
 0x139   : > { %p4245_p12 = pnand %p4244_p4, %p4238_p9 }
 0x13b   : > { %4248 = shalt.err (!%p4245_p12)
}
 0x13c   : > { %s4249_s19 = scalar_lea.vmem %s5058_s16, 128  ;;  %s4542_s23 = smov [#allocation4]  }
 0x13d   : > { %p4250_p3 = scmp.ne.s32.totalorder %s5058_s16, %s4249_s19  ;;  %s4254_s11 = sshll.u32 %s4542_s23, 4  ;;  %s4255_s11 = int_to_ptr.vmem [resolvable:$false] %s4254_s11 }
 0x13e   : > { %s4256_s24 = scalar_lea.vmem %s4255_s11, 256  ;;  %p4257_p6 = scmp.lt.s32.totalorder %s5058_s16, %s4255_s11 }
 0x13f   : > { %p4252_p7 = pnand %p4250_p3, %p4236_p5  ;;  %p4258_p0 = scmp.lt.s32.totalorder %s4256_s24, %s4249_s19 }
 0x141   : > { %p4253_p2 = pneg %p4252_p7  ;;  %p4259_p10 = por %p4258_p0, %p4257_p6 }
 0x143   : > { %p4260_p8 = pnand %p4259_p10, %p4253_p2 }
 0x145   : > { %4263 = shalt.err (!%p4260_p8)
}
 0x146   : > { %3799 = dma.hbm_to_vmem [thread:$0]  (!%p5054_p11), %s5048_s18, 128, %s5058_s16, %s624_s29  }
 0x147   : > { %s677_s25 = scalar_lea.vmem [#allocation9], %s4819_s12  ;;  %s5677_s0 = sld [smem:[#allocation52_spill]] }
 0x148   : > { %s684_s30 = sshll.u32 %s677_s25, 4  ;;  %s4264_s11 = scalar_lea.hbm %s5064_s15, 16  ;;  %s685_s30 = int_to_ptr.vmem [resolvable:$true] %s684_s30 }
 0x149   : > { %p4265_p6 = scmp.ne.s32.totalorder %s5064_s15, %s4264_s11  ;;  %p5679_p2 = scmp.ne.s32.totalorder %s5648_s7, 0 }
 0x14a   : > { %s4269_s14 = scalar_lea.hbm %s5676_s5, 32  ;;  %p4270_p11 = scmp.lt.u32.totalorder %s5064_s15, %s5676_s5 }
 0x14b   : > { %p4267_p5 = pnand %p4265_p6, %p5679_p2  ;;  %p4271_p1 = scmp.lt.u32.totalorder %s4269_s14, %s4264_s11 }
 0x14c   : > { %p4273_p12 = scmp.lt.u32.totalorder %s4264_s11, %s5064_s15 }
 0x14d   : > { %s5678_s19 = smov %s5677_s0  ;;  %s5096_s23 = scalar_lea.hbm %s5677_s0, %s4822_s27 }
 0x14e   : > { %p4268_p9 = pneg %p4267_p5  ;;  %p4272_p4 = por %p4271_p1, %p4270_p11 }
 0x150   : > { %p4274_p3 = por %p4273_p12, %p4272_p4 }
 0x152   : > { %p4275_p7 = pnand %p4274_p3, %p4268_p9 }
 0x154   : > { %4278 = shalt.err (!%p4275_p7)
}
 0x155   : > { %s4279_s16 = scalar_lea.vmem %s685_s30, 16  ;;  %s4543_s29 = smov [#allocation9]  }
 0x156   : > { %p4280_p0 = scmp.ne.s32.totalorder %s685_s30, %s4279_s16  ;;  %s4284_s18 = sshll.u32 %s4543_s29, 4  ;;  %s4285_s18 = int_to_ptr.vmem [resolvable:$false] %s4284_s18 }
 0x157   : > { %s4286_s25 = scalar_lea.vmem %s4285_s18, 32  ;;  %p4287_p6 = scmp.lt.s32.totalorder %s685_s30, %s4285_s18 }
 0x158   : > { %p4282_p10 = pnand %p4280_p0, %p5679_p2  ;;  %p4288_p5 = scmp.lt.s32.totalorder %s4286_s25, %s4279_s16 }
 0x15a   : > { %p4283_p8 = pneg %p4282_p10  ;;  %p4289_p13 = por %p4288_p5, %p4287_p6 }
 0x15c   : > { %p4290_p1 = pnand %p4289_p13, %p4283_p8 }
 0x15e   : > { %4293 = shalt.err (!%p4290_p1)
}
 0x15f   : > { %p5680_p11 = scmp.ne.s32.totalorder %s5647_s2, 0  ;;  %s5681_s14 = scalar_lea.sflag [#allocation8], %s4814_s10 }
 0x160   : > { %s711_s22 = scalar_lea.vmem [#allocation12], %s4819_s12  ;;  %s5682_s0 = sld [smem:[#allocation56_spill]] }
 0x161   : > { %3805 = dma.hbm_to_vmem [thread:$0]  (!%p5680_p11), %s5064_s15, 16, %s685_s30, %s5681_s14  }
 0x162   : > { %s718_s4 = sshll.u32 %s711_s22, 4  ;;  %s4294_s24 = scalar_lea.hbm %s5096_s23, 16  ;;  %s719_s4 = int_to_ptr.vmem [resolvable:$true] %s718_s4 }
 0x163   : > { %p4295_p13 = scmp.ne.s32.totalorder %s5096_s23, %s4294_s24  ;;  %s4299_s18 = scalar_lea.hbm %s5678_s19, 32 }
 0x164   : > { %p4300_p12 = scmp.lt.u32.totalorder %s5096_s23, %s5678_s19  ;;  %p4301_p3 = scmp.lt.u32.totalorder %s4299_s18, %s4294_s24 }
 0x165   : > { %p4297_p9 = pnand %p4295_p13, %p5679_p2  ;;  %p4303_p0 = scmp.lt.u32.totalorder %s4294_s24, %s5096_s23 }
 0x166   : > { %s5683_s11 = smov %s5682_s0  ;;  %s5122_s13 = scalar_lea.hbm %s5682_s0, %s4822_s27 }
 0x167   : > { %p4298_p4 = pneg %p4297_p9  ;;  %p4302_p7 = por %p4301_p3, %p4300_p12 }
 0x169   : > { %p4304_p10 = por %p4303_p0, %p4302_p7 }
 0x16b   : > { %p4305_p8 = pnand %p4304_p10, %p4298_p4 }
 0x16d   : > { %4308 = shalt.err (!%p4305_p8)
}
 0x16e   : > { %s4309_s15 = scalar_lea.vmem %s719_s4, 16  ;;  %s4544_s30 = smov [#allocation12]  }
 0x16f   : > { %p4310_p6 = scmp.ne.s32.totalorder %s719_s4, %s4309_s15  ;;  %s4314_s14 = sshll.u32 %s4544_s30, 4  ;;  %s4315_s14 = int_to_ptr.vmem [resolvable:$false] %s4314_s14 }
 0x170   : > { %s4316_s22 = scalar_lea.vmem %s4315_s14, 32  ;;  %p4317_p13 = scmp.lt.s32.totalorder %s719_s4, %s4315_s14 }
 0x171   : > { %p4312_p5 = pnand %p4310_p6, %p5679_p2  ;;  %p4318_p9 = scmp.lt.s32.totalorder %s4316_s22, %s4309_s15 }
 0x173   : > { %p4313_p1 = pneg %p4312_p5  ;;  %p4319_p11 = por %p4318_p9, %p4317_p13 }
 0x175   : > { %p4320_p3 = pnand %p4319_p11, %p4313_p1 }
 0x177   : > { %4323 = shalt.err (!%p4320_p3)
}
 0x178   : > { %p5684_p12 = scmp.ne.s32.totalorder %s5647_s2, 0  ;;  %s5685_s5 = scalar_lea.sflag [#allocation11], %s4814_s10 }
 0x179   : > { %s761_s28 = scalar_lea.vmem [#allocation15], %s4819_s12  ;;  %s5686_s16 = sld [smem:[#allocation58_spill]] }
 0x17a   : > { %3811 = dma.hbm_to_vmem [thread:$0]  (!%p5684_p12), %s5096_s23, 16, %s719_s4, %s5685_s5  }
 0x17b   : > { %s768_s9 = sshll.u32 %s761_s28, 4  ;;  %s4324_s18 = scalar_lea.hbm %s5122_s13, 16  ;;  %s769_s9 = int_to_ptr.vmem [resolvable:$true] %s768_s9 }
 0x17c   : > { %p4325_p11 = scmp.ne.s32.totalorder %s5122_s13, %s4324_s18  ;;  %s4329_s30 = scalar_lea.hbm %s5683_s11, 32 }
 0x17d   : > { %p4330_p0 = scmp.lt.u32.totalorder %s5122_s13, %s5683_s11  ;;  %p4331_p10 = scmp.lt.u32.totalorder %s4329_s30, %s4324_s18 }
 0x17e   : > { %p4327_p4 = pnand %p4325_p11, %p5679_p2  ;;  %p4333_p6 = scmp.lt.u32.totalorder %s4324_s18, %s5122_s13 }
 0x17f   : > { %s5148_s29 = scalar_lea.hbm %s5686_s16, %s4822_s27  ;;  %p4332_p8 = por %p4331_p10, %p4330_p0 }
 0x180   : > { %p4328_p7 = pneg %p4327_p4 }
 0x181   : > { %p4334_p5 = por %p4333_p6, %p4332_p8 }
 0x183   : > { %p4335_p1 = pnand %p4334_p5, %p4328_p7 }
 0x185   : > { %4338 = shalt.err (!%p4335_p1)
}
 0x186   : > { %s4339_s27 = scalar_lea.vmem %s769_s9, 16  ;;  %s4545_s23 = smov [#allocation15]  }
 0x187   : > { %p4340_p13 = scmp.ne.s32.totalorder %s769_s9, %s4339_s27  ;;  %s4344_s4 = sshll.u32 %s4545_s23, 4  ;;  %s4345_s4 = int_to_ptr.vmem [resolvable:$false] %s4344_s4 }
 0x188   : > { %s4346_s5 = scalar_lea.vmem %s4345_s4, 32  ;;  %p4347_p11 = scmp.lt.s32.totalorder %s769_s9, %s4345_s4 }
 0x189   : > { %p4342_p9 = pnand %p4340_p13, %p5679_p2  ;;  %p4348_p4 = scmp.lt.s32.totalorder %s4346_s5, %s4339_s27 }
 0x18b   : > { %p4343_p3 = pneg %p4342_p9  ;;  %p4349_p12 = por %p4348_p4, %p4347_p11 }
 0x18d   : > { %p4350_p0 = pnand %p4349_p12, %p4343_p3 }
 0x18f   : > { %4353 = shalt.err (!%p4350_p0)
}
 0x190   : > { %p5687_p10 = scmp.ne.s32.totalorder %s5647_s2, 0  ;;  %s5688_s28 = scalar_lea.sflag [#allocation14], %s4814_s10 }
 0x191   : > { %s795_s0 = scalar_lea.vmem [#allocation18], %s4819_s12  ;;  %s4354_s18 = scalar_lea.hbm %s5148_s29, 16 }
 0x192   : > { %3817 = dma.hbm_to_vmem [thread:$0]  (!%p5687_p10), %s5122_s13, 16, %s769_s9, %s5688_s28  }
 0x193   : > { %s802_s24 = sshll.u32 %s795_s0, 4  ;;  %p4355_p7 = scmp.ne.s32.totalorder %s5148_s29, %s4354_s18  ;;  %s803_s24 = int_to_ptr.vmem [resolvable:$true] %s802_s24 }
 0x194   : > { %s4359_s30 = scalar_lea.hbm %s5686_s16, 32  ;;  %p4360_p6 = scmp.lt.u32.totalorder %s5148_s29, %s5686_s16 }
 0x195   : > { %p4357_p12 = pnand %p4355_p7, %p5679_p2  ;;  %p4361_p5 = scmp.lt.u32.totalorder %s4359_s30, %s4354_s18 }
 0x196   : > { %p4363_p13 = scmp.lt.u32.totalorder %s4354_s18, %s5148_s29 }
 0x197   : > { %p4358_p8 = pneg %p4357_p12  ;;  %p4362_p1 = por %p4361_p5, %p4360_p6 }
 0x199   : > { %p4364_p9 = por %p4363_p13, %p4362_p1 }
 0x19b   : > { %p4365_p3 = pnand %p4364_p9, %p4358_p8 }
 0x19d   : > { %4368 = shalt.err (!%p4365_p3)
}
 0x19e   : > { %s4369_s12 = scalar_lea.vmem %s803_s24, 16  ;;  %s4546_s13 = smov [#allocation18]  }
 0x19f   : > { %p4370_p11 = scmp.ne.s32.totalorder %s803_s24, %s4369_s12  ;;  %s4374_s9 = sshll.u32 %s4546_s13, 4  ;;  %s4375_s9 = int_to_ptr.vmem [resolvable:$false] %s4374_s9 }
 0x1a0   : > { %s4376_s27 = scalar_lea.vmem %s4375_s9, 32  ;;  %p4377_p7 = scmp.lt.s32.totalorder %s803_s24, %s4375_s9 }
 0x1a1   : > { %p4372_p4 = pnand %p4370_p11, %p5679_p2  ;;  %p4378_p12 = scmp.lt.s32.totalorder %s4376_s27, %s4369_s12 }
 0x1a3   : > { %p4373_p0 = pneg %p4372_p4  ;;  %p4379_p10 = por %p4378_p12, %p4377_p7 }
 0x1a5   : > { %p4380_p5 = pnand %p4379_p10, %p4373_p0 }
 0x1a7   : > { %4383 = shalt.err (!%p4380_p5)
}
 0x1a8   : > { %p5689_p6 = scmp.ne.s32.totalorder %s5647_s2, 0  ;;  %s5690_s23 = scalar_lea.sflag [#allocation17], %s4814_s10 }
 0x1a9   : > { %s5691_s4 = sld [smem:[#allocation41_spill]] }
 0x1aa   : > { %3823 = dma.hbm_to_vmem [thread:$0]  (!%p5689_p6), %s5148_s29, 16, %s803_s24, %s5690_s23  }
 0x1af   : > { %p5692_p8 = scmp.ne.s32.totalorder %s5691_s4, 0 }
 0x1b0   : > { %s5192_s7 = sand.u32 (!%p5692_p8), 1, %s4506_s1   ;;  %p5693_p2 = scmp.ne.s32.totalorder (!%p5692_p8), %s5667_s8, 0 }
 0x1b1   : > { %811 = sbr.rel (%p5692_p8) target bundleno = 4719 (0x126f), region = 96  ;;  %s3410_s5 = sshll.u32 (!%p5692_p8), %s5192_s7, 3 }
 0x1b2   : > { %s814_s28 = scalar_lea.sflag (!%p5692_p8), [#allocation5], %s5192_s7  ;;  %s5196_s0 = scalar_lea.vmem (!%p5692_p8), [#allocation4], %s3410_s5 }
 0x1b8   : > { %4457 = dma.done.wait (%p5693_p2), %s814_s28, 128  }
 0x1b9   : > { %4459 = vsyncadd (%p5693_p2), %s814_s28, 4294967168  ;;  %s5694_s10 = sld [smem:[#allocation34_spill]]  ;;  %s5695_s2 = sld [smem:[#allocation40_spill]] }
 0x1ba   : > { %s822_s29 = sand.u32 1, %s4736_s26  }
 0x1bb   : > { %s823_s18 = scalar_lea.sflag [#allocation8], %s822_s29 }
 0x1bf   : > { %s5204_s24 = sand.u32 1, %s5694_s10   ;;  %p5696_p10 = scmp.ne.s32.totalorder %s5695_s2, 0 }
 0x1c1   : > { %4461 = dma.done.wait (%p5696_p10), %s823_s18, 32  }
 0x1c2   : > { %4463 = vsyncadd (%p5696_p10), %s823_s18, 4294967264  ;;  %s839_s8 = scalar_lea.sflag [#allocation11], %s822_s29 }
 0x1c3   : > { %4465 = dma.done.wait (%p5696_p10), %s839_s8, 32  }
 0x1c4   : > { %4467 = vsyncadd (%p5696_p10), %s839_s8, 4294967264  ;;  %s855_s22 = scalar_lea.sflag [#allocation14], %s822_s29 }
 0x1c5   : > { %4469 = dma.done.wait (%p5696_p10), %s855_s22, 32  }
 0x1c6   : > { %4471 = vsyncadd (%p5696_p10), %s855_s22, 4294967264  ;;  %s871_s9 = scalar_lea.sflag [#allocation17], %s822_s29 }
 0x1c7   : > { %4473 = dma.done.wait (%p5696_p10), %s871_s9, 32  }
 0x1c8   : > { %4475 = vsyncadd (%p5696_p10), %s871_s9, 4294967264  ;;  %p5697_p1 = scmp.eq.s32.totalorder %s4736_s26, 0 }
 0x1ca   : > { %4477 = dma.done.wait (%p5697_p1), [#allocation20], 528   ;;  %p5698_p13 = pmov %p5697_p1 }
 0x1cb   : > { %p5699_p9 = pmov %p5697_p1 }
 0x1cc   : > { %4479 = vsyncadd (%p5698_p13), [#allocation20], 4294966768 }
 0x1cd   : > { %4481 = dma.done.wait (%p5699_p9), [#allocation23], 528   ;;  %p5700_p3 = pmov %p5697_p1 }
 0x1ce   : > { %s5701_s4 = sld [smem:[#allocation36_spill]]  ;;  %s3415_s5 = sshll.u32 %s5192_s7, 4 }
 0x1cf   : > { %4483 = vsyncadd (%p5700_p3), [#allocation23], 4294966768  ;;  %s5702_s8 = sld [smem:[#allocation47_spill]]  ;;  %s5703_s27 = sld [smem:[#allocation49_spill]] }
 0x1d0   : > { %s5704_s14 = sld [smem:[#allocation53_spill]]  ;;  %s5705_s11 = sld [smem:[#allocation55_spill]] }
 0x1d4   : > { %p1004_p11 = scmp.lt.s32.totalorder %s5701_s4, 1  ;;  %p3424_p4 = scmp.ne.s32.totalorder %s5701_s4, 0 }
 0x1d5   : > { %v1028_v0 = vld [vmem:[%s5196_s0] sm:$0xff] (!%p3424_p4)  ;;  %vm1029_vm0 = vcmask (!%p3424_p4), 261120  }
 0x1d6   : > { %s1005_s28 = scalar_select %p1004_p11, %s5701_s4, 1 }
 0x1d7   : > { %1027 = sbr.rel (%p3424_p4) target bundleno = 478 (0x1de), region = 152  ;;  %1030 = vst.msk [vmem:[#allocation2] sm:$0xff] (!%p3424_p4), %vm1029_vm0, %v1028_v0 }
 0x1d8   : > { %s3472_s10 = sshll.u32 %s1005_s28, 5  ;;  %s3475_s2 = sshll.u32 %s1005_s28, 6 }
 0x1d9   : > { %s1008_s22 = scalar_lea.vmem %s5702_s8, %s3472_s10  ;;  %s5247_s13 = scalar_lea.vmem %s5703_s27, %s3472_s10 }
 0x1da   : > { %s5252_s30 = scalar_lea.vmem %s5704_s14, %s3472_s10  ;;  %s5257_s16 = scalar_lea.vmem %s5705_s11, %s3475_s2 }
 0x1db   : > { %s5259_s28 = scalar_lea.vmem [#allocation25], %s3415_s5 }
 0x1de PF: > { %v1032_v1 = vld [vmem:[%s1008_s22] sm:$0xff]  ;;  %v1033_v2 = vld [vmem:[%s1008_s22 + $0x8] sm:$0xff]  ;;  %v1034_v3 = vld [vmem:[%s1008_s22 + $0x10] sm:$0xff]  ;;  %v4547_v4 = vmov 0.0|0.0   ;;  %vm4548_vm1 = vmmov 0   ;;  %v4549_v7 = vmov 0.0  }
 0x1df   : > { %3697 = vmatprep.subr.bf16.mxu1 %v4547_v4  ;;  %v3698_v5 = vpack.c.bf16 %v1033_v2, %v1032_v1  ;;  %v1035_v6 = vld [vmem:[%s1008_s22 + $0x18] sm:$0xff]  ;;  %3551 = vmatprep.mubr.msk.f32.mxu1 %vm4548_vm1, %v4549_v7  ;;  %v5270_v9 = vld [vmem:[#allocation2] sm:$0xff]  ;;  %vm1048_vm2 = vcmask 261120   ;;  %s5706_s11 = scalar_lea.vmem [#allocation7], %s5204_s24  ;;  %s4550_s0 = smov 120   ;;  %vm1125_vm3 = vcmask 64512  }
 0x1e0   : > { %3564 = vmatprep.subr.mxu0 %v4549_v7  ;;  %3566 = vmatprep.mubr.msk.f32.mxu0 %vm4548_vm1, %v4549_v7  ;;  %v3701_v8 = vpack.c.bf16 %v1035_v6, %v1034_v3  ;;  %v3425_v10 = vld [vmem:[%s5706_s11] ss:$0 sm:$0xff]  ;;  %s4551_s25 = smov 96   ;;  %s4552_s15 = smov 80   ;;  %vm1457_vm4 = vcmask 130112   ;;  %vm1628_vm5 = vcmask 195712  }
 0x1e1   : > { %3699 = vmatpush3.bf16.msra.mxu1 %v3698_v5  ;;  %s4553_s14 = smov 88   ;;  %s4554_s12 = smov 72   ;;  %vm1799_vm6 = vcmask 261312   ;;  %vm2012_vm7 = vcmask 523264  }
 0x1e2   : > { %3700 = vmatprep.subr.bf16.mxu1 %v4547_v4  ;;  %s4555_s27 = smov 112   ;;  %s4556_s23 = smov 104  }
 0x1e3   : > { %s4557_s4 = smov 56   ;;  %s4558_s5 = smov 64  }
 0x1e4   : > { %s4559_s10 = smov 48   ;;  %s4560_s2 = smov 40  }
 0x1e5   : > { %3702 = vmatpush3.bf16.msra.mxu1 %v3701_v8  ;;  %s4561_s29 = smov 8   ;;  %s4562_s18 = smov 16  }
 0x1e6   : > { %3554 = vmatprep.subr.mxu1 %v4549_v7  ;;  %s4563_s8 = smov 24   ;;  %s5709_s22 = scalar_lea.vmem [#allocation12], %s5204_s24 }
 0x1e7   : > { %s5710_s9 = scalar_lea.vmem [#allocation13], %s5204_s24  ;;  %s5711_s26 = scalar_lea.vmem [#allocation15], %s5204_s24 }
 0x1e8   : > { %3552 = vmatmul.mubr.msk.f32.vlgmr.msra.gmra.mrb[0].mxu1 %vm1048_vm2, %v5270_v9  ;;  %s5713_s11 = scalar_lea.vmem [#allocation18], %s5204_s24 }
 0x1e9   : > { %3556 = vmatprep.mubr.msk.f32.mxu1 %vm4548_vm1, %v4549_v7 }
 0x2bb   : > { %v1118_v11 = vpop.f32.mrb[0].mxu1 }
 0x2bc   : > { %v5279_v12 = vadd.f32 %v3425_v10, %v1118_v11  ;;  %v3553_v13 = vpop.f32.mrb[1].mxu1 }
 0x2bd   : > { %v1038_v13 = vld [vmem:[%s5247_s13 + $0x8] sm:$0xff] }
 0x2be   : > { %1288 = vrot.lane.b32.xlu1 %v5279_v12, %s4550_s0  ;;  %1123 = vrot.lane.b32.xlu0 %v5279_v12, %s4551_s25  ;;  %s5714_s0 = sld [smem:[#allocation36_spill]] }
 0x2c2   : > { %1461 = vrot.lane.b32.xlu1 %v5279_v12, %s4552_s15  ;;  %1290 = vrot.lane.b32.xlu0 %v5279_v12, %s4553_s14 }
 0x2c4   : > { %p3449_p0 = scmp.ne.s32.totalorder %s5714_s0, 1 }
 0x2c5   : > { %vm4565_vm8 = vmmov (!%p3449_p0), 0   ;;  %s4568_s25 = smov (!%p3449_p0), 96   ;;  %s4569_s15 = smov (!%p3449_p0), 80  }
 0x2c6   : > { %1632 = vrot.lane.b32.xlu1 %v5279_v12, %s4554_s12  ;;  %1459 = vrot.lane.b32.xlu0 %v5279_v12, %s4555_s27  ;;  %s4570_s14 = smov (!%p3449_p0), 88   ;;  %s4571_s12 = smov (!%p3449_p0), 72  }
 0x2c7   : > { %s4572_s27 = smov (!%p3449_p0), 112  }
 0x2ca   : > { %1630 = vrot.lane.b32.xlu0 %v5279_v12, %s4556_s23  ;;  %s4573_s23 = smov (!%p3449_p0), 104  }
 0x330   : > { %v1289_v14 = vpop.permute.xlu1 %1288  ;;  %v1124_v15 = vpop.permute.xlu0 %1123 }
 0x331   : > { %3555 = vmatpush3.xpose.msk.msra.mxu1 %vm1125_vm3, %v1124_v15  ;;  %v1039_v15 = vld [vmem:[%s5247_s13 + $0x10] sm:$0xff] }
 0x332   : > { %3559 = vmatprep.subr.mxu1 %v4549_v7 }
 0x334   : > { %3557 = vmatmul.mubr.msk.f32.vlgmr.msra.gmra.mrb[2].mxu1 %vm1125_vm3, %v5279_v12  ;;  %v1291_v16 = vpop.permute.xlu0 %1290  ;;  %v1462_v17 = vpop.permute.xlu1 %1461 }
 0x335   : > { %3565 = vmatpush3.xpose.msk.msra.mxu0 %vm1125_vm3, %v1291_v16  ;;  %3561 = vmatprep.mubr.msk.f32.mxu1 %vm4548_vm1, %v4549_v7  ;;  %v1040_v16 = vld [vmem:[%s5247_s13 + $0x18] sm:$0xff] }
 0x336   : > { %3574 = vmatprep.subr.mxu0 %v4549_v7 }
 0x338   : > { %3567 = vmatmul.mubr.msk.f32.vlgmr.msra.gmra.mrb[0].mxu0 %vm1125_vm3, %v1289_v14  ;;  %v1460_v18 = vpop.permute.xlu0 %1459  ;;  %v1633_v19 = vpop.permute.xlu1 %1632 }
 0x339   : > { %3575 = vmatpush3.xpose.msk.msra.mxu0 %vm1125_vm3, %v1462_v17  ;;  %3576 = vmatprep.mubr.msk.f32.mxu0 %vm4548_vm1, %v4549_v7  ;;  %v3707_v17 = vpack.c.bf16 %v1040_v16, %v1039_v15 }
 0x33a   : > { %3584 = vmatprep.subr.mxu0 %v4549_v7 }
 0x33c   : > { %3577 = vmatmul.mubr.msk.f32.vlgmr.msra.gmra.mrb[2].mxu0 %vm1125_vm3, %v1460_v18  ;;  %v1631_v20 = vpop.permute.xlu0 %1630 }
 0x33d   : > { %3585 = vmatpush3.xpose.msk.msra.mxu0 %vm1125_vm3, %v1633_v19  ;;  %3586 = vmatprep.mubr.msk.f32.mxu0 %vm4548_vm1, %v4549_v7 }
 0x33e   : > { %3703 = vmatprep.subr.bf16.mxu0 %v4547_v4 }
 0x340   : > { %3587 = vmatmul.mubr.msk.f32.vlgmr.msra.gmra.mrb[4].mxu0 %vm1125_vm3, %v1631_v20 }
 0x341   : > { %3602 = vmatprep.mubr.msk.f32.mxu0 %vm4548_vm1, %v4549_v7 }
 0x407   : > { %v1196_v21 = vpop.f32.mrb[2].mxu1 }
 0x408   : > { %v3558_v22 = vpop.f32.mrb[3].mxu1  ;;  %v1200_v23 = vsel %vm1125_vm3, %v1196_v21, -inf }
 0x409   : > { %1201 = vmax.xlane.f32.xlu1 %v1200_v23 }
 0x40b   : > { %v1362_v24 = vpop.f32.mrb[0].mxu0 }
 0x40c   : > { %v3568_v25 = vpop.f32.mrb[1].mxu0  ;;  %v1366_v26 = vsel %vm1125_vm3, %v1362_v24, -inf }
 0x40d   : > { %1367 = vmax.xlane.f32.xlu0 %v1366_v26 }
 0x40f   : > { %v1533_v27 = vpop.f32.mrb[2].mxu0 }
 0x410   : > { %v3578_v28 = vpop.f32.mrb[3].mxu0  ;;  %v1537_v29 = vsel %vm1125_vm3, %v1533_v27, -inf }
 0x411   : > { %1538 = vmax.xlane.f32.xlu0 %v1537_v29 }
 0x413   : > { %v1704_v30 = vpop.f32.mrb[4].mxu0 }
 0x414   : > { %v3588_v31 = vpop.f32.mrb[5].mxu0  ;;  %v1708_v32 = vsel %vm1125_vm3, %v1704_v30, -inf }
 0x415   : > { %1709 = vmax.xlane.f32.xlu1 %v1708_v32 }
 0x426   : > { %1377 = vrot.lane.b32.xlu1 %v5279_v12, %s4557_s4  ;;  %s4574_s4 = smov (!%p3449_p0), 56  }
 0x496   : > { %v1202_v33 = vpop.xlane.xlu1 %1201 }
 0x497   : > { %v1203_v34 = vsub.f32 %v1196_v21, %v1202_v33 }
 0x499   : > { %v1204_v35 = vmul.f32 1.442695, %v1203_v34 }
 0x49a   : > { %v1368_v36 = vpop.xlane.xlu0 %1367 }
 0x49b   : > { %3966 = vpow2.f32 %v1204_v35  ;;  %v1369_v37 = vsub.f32 %v1362_v24, %v1368_v36  ;;  %v1912_v36 = vld [vmem:[%s5252_s30] sm:$0xff] }
 0x49d   : > { %v1370_v38 = vmul.f32 1.442695, %v1369_v37  ;;  %v1913_v37 = vld [vmem:[%s5252_s30 + $0x8] sm:$0xff] }
 0x49e   : > { %v1539_v48 = vpop.xlane.xlu0 %1538 }
 0x49f   : > { %3968 = vpow2.f32 %v1370_v38  ;;  %v1540_v49 = vsub.f32 %v1533_v27, %v1539_v48  ;;  %v3710_v38 = vpack.c.bf16 %v1913_v37, %v1912_v36  ;;  %v2002_v48 = vld [vmem:[%s5257_s16 + $0x28] sm:$0xff] }
 0x4a1   : > { %v1541_v50 = vmul.f32 1.442695, %v1540_v49 }
 0x4a2   : > { %v1710_v39 = vpop.xlane.xlu1 %1709 }
 0x4a3   : > { %v1711_v40 = vsub.f32 %v1704_v30, %v1710_v39  ;;  %v1915_v39 = vld [vmem:[%s5252_s30 + $0x18] sm:$0xff] }
 0x4a5   : > { %v3967_v41 = vpop.eup %3966  ;;  %v1712_v42 = vmul.f32 1.442695, %v1711_v40 }
 0x4a6   : > { %v1206_v43 = vsel %vm1125_vm3, %v3967_v41, 0.0  ;;  %v1378_v53 = vpop.permute.xlu1 %1377 }
 0x4a7   : > { %3970 = vpow2.f32 %v1712_v42  ;;  %1207 = vadd.xlane.f32.xlu0 %v1206_v43  ;;  %v1998_v42 = vld [vmem:[%s5257_s16 + $0x8] sm:$0xff]  ;;  %v1999_v43 = vld [vmem:[%s5257_s16 + $0x10] sm:$0xff] }
 0x4a8   : > { %3972 = vpow2.f32 %v1541_v50 }
 0x4a9   : > { %v3969_v44 = vpop.eup %3968 }
 0x4aa   : > { %v1372_v45 = vsel %vm1125_vm3, %v3969_v44, 0.0 }
 0x4ab   : > { %1373 = vadd.xlane.f32.xlu1 %v1372_v45  ;;  %v2000_v45 = vld [vmem:[%s5257_s16 + $0x18] sm:$0xff] }
 0x4b1   : > { %v3971_v46 = vpop.eup %3970 }
 0x4b2   : > { %v1714_v47 = vsel %vm1125_vm3, %v3971_v46, 0.0  ;;  %v3973_v51 = vpop.eup %3972 }
 0x4b3   : > { %1715 = vadd.xlane.f32.xlu1 %v1714_v47  ;;  %v1543_v52 = vsel %vm1125_vm3, %v3973_v51, 0.0  ;;  %v2001_v47 = vld [vmem:[%s5257_s16 + $0x20] sm:$0xff] }
 0x4b4   : > { %v3722_v49 = vpack.c.bf16 %v2002_v48, %v2001_v47 }
 0x4bd   : > { %1211 = vrot.lane.b32.xlu0 %v5279_v12, %s4558_s5  ;;  %s4575_s5 = smov (!%p3449_p0), 64  }
 0x4c4   : > { %1548 = vrot.lane.b32.xlu1 %v5279_v12, %s4559_s10  ;;  %s4576_s10 = smov (!%p3449_p0), 48  }
 0x4dc   : > { %1544 = vadd.xlane.f32.xlu0 %v1543_v52 }
 0x4f2   : > { %1719 = vrot.lane.b32.xlu0 %v5279_v12, %s4560_s2  ;;  %v1037_v12 = vld [vmem:[%s5247_s13] sm:$0xff]  ;;  %s5707_s13 = scalar_lea.vmem [#allocation9], %s5204_s24  ;;  %s4577_s2 = smov (!%p3449_p0), 40  }
 0x4f3   : > { %v3704_v14 = vpack.c.bf16 %v1038_v13, %v1037_v12  ;;  %v3439_v26 = vld [vmem:[%s5707_s13] ss:$0 sm:$0xff]  ;;  %s5715_s13 = sld [smem:[#allocation63_spill]] (!%p3449_p0) }
 0x4f5   : > { %3705 = vmatpush3.bf16.msra.mxu0 %v3704_v14 }
 0x4f6   : > { %3706 = vmatprep.subr.bf16.mxu0 %v4547_v4 }
 0x4f9   : > { %3708 = vmatpush3.bf16.msra.mxu0 %v3707_v17 }
 0x4fa   : > { %3715 = vmatprep.subr.bf16.mxu0 %v4547_v4 }
 0x534   : > { %v1208_v54 = vpop.xlane.xlu0 %1207 }
 0x535   : > { %3974 = vrcp.f32 %v1208_v54 }
 0x538   : > { %v1212_v55 = vpop.permute.xlu0 %1211  ;;  %v1374_v56 = vpop.xlane.xlu1 %1373 }
 0x539   : > { %3976 = vrcp.f32 %v1374_v56  ;;  %3560 = vmatpush3.msra.mxu1 %v1212_v55  ;;  %v3442_v56 = vld [vmem:[%s5709_s22] ss:$0 sm:$0xff] }
 0x53a   : > { %3569 = vmatprep.subr.mxu1 %v4549_v7 }
 0x53f   : > { %v3975_v57 = vpop.eup %3974 }
 0x540   : > { %v1210_v58 = vmul.f32 %v3975_v57, %v3967_v41  ;;  %v1716_v59 = vpop.xlane.xlu1 %1715  ;;  %v1997_v41 = vld [vmem:[%s5257_s16] sm:$0xff] }
 0x542   : > { %3562 = vmatmul.mubr.msk.f32.vlgmr.msra.gmra.mrb[4].mxu1 %vm1125_vm3, %v1210_v58 }
 0x543   : > { %v3977_v60 = vpop.eup %3976  ;;  %3570 = vmatpush3.msra.mxu1 %v1378_v53  ;;  %3571 = vmatprep.mubr.msk.f32.mxu1 %vm4548_vm1, %v4549_v7 }
 0x544   : > { %v1376_v61 = vmul.f32 %v3977_v60, %v3969_v44  ;;  %v1549_v62 = vpop.permute.xlu1 %1548  ;;  %3579 = vmatprep.subr.mxu1 %v4549_v7  ;;  %v3716_v44 = vpack.c.bf16 %v1998_v42, %v1997_v41  ;;  %v2004_v60 = vld [vmem:[%s5257_s16 + $0x38] sm:$0xff] }
 0x546   : > { %3572 = vmatmul.mubr.msk.f32.vlgmr.msra.gmra.mrb[6].mxu1 %vm1125_vm3, %v1376_v61 }
 0x547   : > { %3580 = vmatpush3.msra.mxu1 %v1549_v62  ;;  %3581 = vmatprep.mubr.msk.f32.mxu1 %vm4548_vm1, %v4549_v7 }
 0x548   : > { %3589 = vmatprep.subr.mxu1 %v4549_v7 }
 0x569   : > { %v1545_v63 = vpop.xlane.xlu0 %1544 }
 0x56a   : > { %3978 = vrcp.f32 %v1545_v63 }
 0x56b   : > { %3980 = vrcp.f32 %v1716_v59  ;;  %v2003_v59 = vld [vmem:[%s5257_s16 + $0x30] sm:$0xff]  ;;  %s5712_s16 = scalar_lea.vmem [#allocation16], %s5204_s24 }
 0x56c   : > { %v3725_v61 = vpack.c.bf16 %v2004_v60, %v2003_v59 }
 0x56d   : > { %v1720_v3 = vpop.permute.xlu0 %1719 }
 0x574   : > { %v3979_v0 = vpop.eup %3978 }
 0x575   : > { %v1547_v1 = vmul.f32 %v3979_v0, %v3973_v51  ;;  %v3981_v2 = vpop.eup %3980 }
 0x576   : > { %v1718_v5 = vmul.f32 %v3981_v2, %v3971_v46  ;;  %v3719_v46 = vpack.c.bf16 %v2000_v45, %v1999_v43  ;;  %v3445_v2 = vld [vmem:[%s5711_s26] ss:$0 sm:$0xff] }
 0x577   : > { %3582 = vmatmul.mubr.msk.f32.vlgmr.msra.gmra.mrb[8].mxu1 %vm1125_vm3, %v1547_v1 }
 0x578   : > { %3590 = vmatpush3.msra.mxu1 %v1720_v3  ;;  %3591 = vmatprep.mubr.msk.f32.mxu1 %vm4548_vm1, %v4549_v7 }
 0x579   : > { %3709 = vmatprep.subr.bf16.mxu1 %v4547_v4 }
 0x57b   : > { %3592 = vmatmul.mubr.msk.f32.vlgmr.msra.gmra.mrb[10].mxu1 %vm1125_vm3, %v1718_v5 }
 0x57c   : > { %3613 = vmatprep.mubr.msk.f32.mxu1 %vm4548_vm1, %v4549_v7  ;;  %3711 = vmatpush3.bf16.msra.mxu1 %v3710_v38 }
 0x57d   : > { %3712 = vmatprep.subr.bf16.mxu1 %v4547_v4 }
 0x615   : > { %v1283_v6 = vpop.f32.mrb[4].mxu1 }
 0x616   : > { %1287 = vst.msk [vmem:[#allocation3] sm:$0xff] %vm1125_vm3, %v1283_v6  ;;  %v3563_v8 = vpop.f32.mrb[5].mxu1 }
 0x619   : > { %v1449_v10 = vpop.f32.mrb[6].mxu1 }
 0x61a   : > { %1454 = vrot.lane.b32.xlu1 %v1449_v10, %s4561_s29  ;;  %v3573_v11 = vpop.f32.mrb[7].mxu1  ;;  %s4578_s29 = smov (!%p3449_p0), 8  }
 0x64a   : > { %v1620_v18 = vpop.f32.mrb[8].mxu1 }
 0x64b   : > { %1625 = vrot.lane.b32.xlu0 %v1620_v18, %s4562_s18  ;;  %v3583_v19 = vpop.f32.mrb[9].mxu1 }
 0x64e   : > { %v1791_v20 = vpop.f32.mrb[10].mxu1 }
 0x64f   : > { %1796 = vrot.lane.b32.xlu1 %v1791_v20, %s4563_s8  ;;  %v3593_v21 = vpop.f32.mrb[11].mxu1  ;;  %v3447_v20 = vld [vmem:[%s5712_s16] ss:$0 sm:$0xff]  ;;  %s4579_s16 = smov (!%p3449_p0), 16  }
 0x68c   : > { %v1455_v22 = vpop.permute.xlu1 %1454 }
 0x68d   : > { %1458 = vst.msk [vmem:[#allocation3] sm:$0xff] %vm1457_vm4, %v1455_v22  ;;  %v3448_v22 = vld [vmem:[%s5713_s11] ss:$0 sm:$0xff] }
 0x6bd   : > { %v1626_v23 = vpop.permute.xlu0 %1625 }
 0x6be   : > { %1629 = vst.msk [vmem:[#allocation3] sm:$0xff] %vm1628_vm5, %v1626_v23 }
 0x6c1   : > { %v1797_v24 = vpop.permute.xlu1 %1796 }
 0x6c2   : > { %1800 = vst.msk [vmem:[#allocation3] sm:$0xff] %vm1799_vm6, %v1797_v24 }
 0x6c9   : > { %v1801_v25 = vld [vmem:[#allocation3] sm:$0xff] }
 0x6ca   : > { %3603 = vmatmul.mubr.msk.f32.vlgmr.msra.gmra.mrb[6].mxu0 %vm1048_vm2, %v1801_v25  ;;  %v2121_v25 = vld [vmem:[#allocation19] sm:$0xff] (!%p3449_p0) }
 0x6cb   : > { %3632 = vmatprep.mubr.msk.f32.mxu0 %vm4548_vm1, %v4549_v7  ;;  %3717 = vmatpush3.bf16.msra.mxu0 %v3716_v44 }
 0x6cc   : > { %3718 = vmatprep.subr.bf16.mxu0 %v4547_v4 }
 0x6cf   : > { %3720 = vmatpush3.bf16.msra.mxu0 %v3719_v46 }
 0x6d0   : > { %3721 = vmatprep.subr.bf16.mxu0 %v4547_v4 }
 0x6d3   : > { %3723 = vmatpush3.bf16.msra.mxu0 %v3722_v49 }
 0x6d4   : > { %3724 = vmatprep.subr.bf16.mxu0 %v4547_v4  ;;  %v3443_v4 = vld [vmem:[%s5710_s9] ss:$0 sm:$0xff] }
 0x6d7   : > { %3726 = vmatpush3.bf16.msra.mxu0 %v3725_v61 }
 0x79d   : > { %v1877_v27 = vpop.f32.mrb[6].mxu0 }
 0x79e   : > { %v1878_v28 = vadd.f32 %v3439_v26, %v1877_v27  ;;  %v3604_v29 = vpop.f32.mrb[7].mxu0  ;;  %v2122_v26 = vld [vmem:[#allocation19 + $0x8] sm:$0xff] (!%p3449_p0)  ;;  %v2123_v27 = vld [vmem:[#allocation19 + $0x10] sm:$0xff] (!%p3449_p0) }
 0x79f   : > { %v3728_v29 = vpack.c.bf16 (!%p3449_p0), %v2122_v26, %v2121_v25 }
 0x7a0   : > { %v1881_v30 = vadd.f32 %v1878_v28, %v5270_v9  ;;  %v1914_v9 = vld [vmem:[%s5252_s30 + $0x10] sm:$0xff]  ;;  %s5708_s30 = scalar_lea.vmem [#allocation10], %s5204_s24  ;;  %v4564_v28 = vmov (!%p3449_p0), 0.0|0.0   ;;  %s4567_s24 = smov (!%p3449_p0), 120  }
 0x7a1   : > { %v3713_v40 = vpack.c.bf16 %v1915_v39, %v1914_v9  ;;  %v3441_v54 = vld [vmem:[%s5708_s30] ss:$0 sm:$0xff]  ;;  %3727 = vmatprep.subr.bf16.mxu0 (!%p3449_p0), %v4564_v28 }
 0x7a2   : > { %v1884_v31 = vsel %vm1048_vm2, %v1881_v30, 0.0 }
 0x7a3   : > { %1885 = vadd.xlane.f32.xlu0 %v1884_v31  ;;  %3714 = vmatpush3.bf16.msra.mxu1 %v3713_v40  ;;  %v4566_v31 = vmov (!%p3449_p0), 0.0  }
 0x7a4   : > { %3646 = vmatprep.subr.mxu1 (!%p3449_p0), %v4566_v31 }
 0x830   : > { %v1886_v32 = vpop.xlane.xlu0 %1885 }
 0x831   : > { %v1888_v33 = vmul.f32 0.03125, %v1886_v32 }
 0x833   : > { %v1889_v34 = vsub.f32 %v1881_v30, %v1888_v33  ;;  %v2124_v30 = vld [vmem:[#allocation19 + $0x18] sm:$0xff] (!%p3449_p0)  ;;  %v3450_v33 = vld [vmem:[#allocation21] ss:$0 sm:$0xff] (!%p3449_p0) }
 0x834   : > { %v3731_v32 = vpack.c.bf16 (!%p3449_p0), %v2124_v30, %v2123_v27 }
 0x835   : > { %v1890_v35 = vmul.f32 %v1889_v34, %v1889_v34 }
 0x837   : > { %v1891_v7 = vsel %vm1048_vm2, %v1890_v35, 0.0 }
 0x838   : > { %1892 = vadd.xlane.f32.xlu1 %v1891_v7 }
 0x8c5   : > { %v1893_v50 = vpop.xlane.xlu1 %1892 }
 0x8c6   : > { %v1894_v51 = vmul.f32 0.03125, %v1893_v50 }
 0x8c8   : > { %v1895_v52 = vadd.f32 1e-05, %v1894_v51 }
 0x8ca   : > { %3982 = vrsqrt.f32 %v1895_v52 }
 0x8d4   : > { %v3983_v53 = vpop.eup %3982 }
 0x8d5   : > { %v1897_v55 = vmul.f32 %v3983_v53, %v1889_v34 }
 0x8d7   : > { %v1904_v57 = vmul.f32 %v3441_v54, %v1897_v55 }
 0x8d9   : > { %v1911_v58 = vadd.f32 %v3442_v56, %v1904_v57 }
 0x8db   : > { %3614 = vmatmul.mubr.msk.f32.vlgmr.msra.gmra.mrb[12].mxu1 %vm1048_vm2, %v1911_v58 }
 0x8dc   : > { %3648 = vmatprep.mubr.msk.f32.mxu1 (!%p3449_p0), %vm4565_vm8, %v4566_v31 }
 0x9ae   : > { %v1992_v62 = vpop.f32.mrb[12].mxu1 }
 0x9af   : > { %v1993_v63 = vadd.f32 %v3443_v4, %v1992_v62  ;;  %v3615_v0 = vpop.f32.mrb[13].mxu1 }
 0x9b1   : > { %v1996_v1 = vmax.f32 %v1993_v63, 0.0 }
 0x9b3   : > { %3633 = vmatmul.mubr.msk.f32.vlgmr.msra.gmra.mrb[8].mxu0 %vm2012_vm7, %v1996_v1 }
 0x9b4   : > { %3643 = vmatprep.mubr.msk.f32.mxu0 (!%p3449_p0), %vm4565_vm8, %v4566_v31  ;;  %3729 = vmatpush3.bf16.msra.mxu0 (!%p3449_p0), %v3728_v29 }
 0x9b5   : > { %3730 = vmatprep.subr.bf16.mxu0 (!%p3449_p0), %v4564_v28 }
 0x9b8   : > { %3732 = vmatpush3.bf16.msra.mxu0 (!%p3449_p0), %v3731_v32 }
 0x9b9   : > { %3656 = vmatprep.subr.mxu0 (!%p3449_p0), %v4566_v31 }
 0xa86   : > { %v2082_v3 = vpop.f32.mrb[8].mxu0 }
 0xa87   : > { %v2083_v5 = vadd.f32 %v3445_v2, %v2082_v3  ;;  %v3634_v6 = vpop.f32.mrb[9].mxu0 }
 0xa89   : > { %v2086_v8 = vadd.f32 %v2083_v5, %v1911_v58 }
 0xa8b   : > { %v2089_v10 = vsel %vm1048_vm2, %v2086_v8, 0.0 }
 0xa8c   : > { %2090 = vadd.xlane.f32.xlu0 %v2089_v10 }
 0xb19   : > { %v2091_v11 = vpop.xlane.xlu0 %2090 }
 0xb1a   : > { %v2092_v12 = vmul.f32 0.03125, %v2091_v11 }
 0xb1c   : > { %v2093_v13 = vsub.f32 %v2086_v8, %v2092_v12 }
 0xb1e   : > { %v2094_v14 = vmul.f32 %v2093_v13, %v2093_v13 }
 0xb20   : > { %v2095_v15 = vsel %vm1048_vm2, %v2094_v14, 0.0 }
 0xb21   : > { %2096 = vadd.xlane.f32.xlu0 %v2095_v15 }
 0xbae   : > { %v2097_v16 = vpop.xlane.xlu0 %2096 }
 0xbaf   : > { %v2098_v17 = vmul.f32 0.03125, %v2097_v16 }
 0xbb1   : > { %v2099_v18 = vadd.f32 1e-05, %v2098_v17 }
 0xbb3   : > { %3984 = vrsqrt.f32 %v2099_v18 }
 0xbbd   : > { %v3985_v19 = vpop.eup %3984 }
 0xbbe   : > { %v2101_v21 = vmul.f32 %v3985_v19, %v2093_v13  ;;  %2120 = sbr.rel (%p3449_p0) target bundleno = 4692 (0x1254), region = 156 }
 0xbc0   : > { %v2108_v23 = vmul.f32 %v3447_v20, %v2101_v21 }
 0xbc2   : > { %v2115_v24 = vadd.f32 %v3448_v22, %v2108_v23 }
 0xbc4   : > { %2116 = vst.msk [vmem:[#allocation2] sm:$0xff] %vm1048_vm2, %v2115_v24  ;;  %3644 = vmatmul.mubr.msk.f32.vlgmr.msra.gmra.mrb[0].mxu0 (!%p3449_p0), %vm1048_vm2, %v2115_v24 }
 0xbc5   : > { %3658 = vmatprep.mubr.msk.f32.mxu0 %vm4565_vm8, %v4566_v31 }
 0xc97   : > { %v2206_v34 = vpop.f32.mrb[0].mxu0 }
 0xc98   : > { %v5399_v35 = vadd.f32 %v3450_v33, %v2206_v34  ;;  %v3645_v7 = vpop.f32.mrb[1].mxu0  ;;  %v2126_v34 = vld [vmem:[#allocation22] sm:$0xff] }
 0xc9a   : > { %2375 = vrot.lane.b32.xlu1 %v5399_v35, %s4567_s24  ;;  %2211 = vrot.lane.b32.xlu0 %v5399_v35, %s4568_s25 }
 0xc9e   : > { %2547 = vrot.lane.b32.xlu1 %v5399_v35, %s4569_s15  ;;  %2377 = vrot.lane.b32.xlu0 %v5399_v35, %s4570_s14 }
 0xca2   : > { %2717 = vrot.lane.b32.xlu1 %v5399_v35, %s4571_s12  ;;  %2545 = vrot.lane.b32.xlu0 %v5399_v35, %s4572_s27  ;;  %s4580_s12 = smov 24  }
 0xca6   : > { %2715 = vrot.lane.b32.xlu0 %v5399_v35, %s4573_s23 }
 0xd0c   : > { %v2376_v36 = vpop.permute.xlu1 %2375  ;;  %v2212_v37 = vpop.permute.xlu0 %2211 }
 0xd0d   : > { %3647 = vmatpush3.xpose.msk.msra.mxu1 %vm1125_vm3, %v2212_v37  ;;  %v2129_v37 = vld [vmem:[#allocation22 + $0x18] sm:$0xff] }
 0xd0e   : > { %3651 = vmatprep.subr.mxu1 %v4566_v31 }
 0xd10   : > { %3649 = vmatmul.mubr.msk.f32.vlgmr.msra.gmra.mrb[0].mxu1 %vm1125_vm3, %v5399_v35  ;;  %v2378_v38 = vpop.permute.xlu0 %2377  ;;  %v2548_v9 = vpop.permute.xlu1 %2547 }
 0xd11   : > { %3657 = vmatpush3.xpose.msk.msra.mxu0 %vm1125_vm3, %v2378_v38  ;;  %3653 = vmatprep.mubr.msk.f32.mxu1 %vm4565_vm8, %v4566_v31 }
 0xd12   : > { %3666 = vmatprep.subr.mxu0 %v4566_v31 }
 0xd14   : > { %3659 = vmatmul.mubr.msk.f32.vlgmr.msra.gmra.mrb[2].mxu0 %vm1125_vm3, %v2376_v36  ;;  %v2546_v39 = vpop.permute.xlu0 %2545  ;;  %v2718_v40 = vpop.permute.xlu1 %2717  ;;  %v2128_v36 = vld [vmem:[#allocation22 + $0x10] sm:$0xff] }
 0xd15   : > { %3667 = vmatpush3.xpose.msk.msra.mxu0 %vm1125_vm3, %v2548_v9  ;;  %3668 = vmatprep.mubr.msk.f32.mxu0 %vm4565_vm8, %v4566_v31  ;;  %v3737_v38 = vpack.c.bf16 %v2129_v37, %v2128_v36 }
 0xd16   : > { %3676 = vmatprep.subr.mxu0 %v4566_v31 }
 0xd18   : > { %3669 = vmatmul.mubr.msk.f32.vlgmr.msra.gmra.mrb[4].mxu0 %vm1125_vm3, %v2546_v39  ;;  %v2716_v41 = vpop.permute.xlu0 %2715  ;;  %v2968_v39 = vld [vmem:[%s5715_s13 + $0x18] sm:$0xff] }
 0xd19   : > { %3677 = vmatpush3.xpose.msk.msra.mxu0 %vm1125_vm3, %v2718_v40  ;;  %3678 = vmatprep.mubr.msk.f32.mxu0 %vm4565_vm8, %v4566_v31  ;;  %v2965_v40 = vld [vmem:[%s5715_s13] sm:$0xff] }
 0xd1a   : > { %3733 = vmatprep.subr.bf16.mxu0 %v4564_v28 }
 0xd1c   : > { %3679 = vmatmul.mubr.msk.f32.vlgmr.msra.gmra.mrb[6].mxu0 %vm1125_vm3, %v2716_v41 }
 0xd1d   : > { %3694 = vmatprep.mubr.msk.f32.mxu0 %vm4565_vm8, %v4566_v31 }
 0xde3   : > { %v2283_v42 = vpop.f32.mrb[0].mxu1 }
 0xde4   : > { %v3650_v43 = vpop.f32.mrb[1].mxu1  ;;  %v2287_v44 = vsel %vm1125_vm3, %v2283_v42, -inf }
 0xde5   : > { %2288 = vmax.xlane.f32.xlu1 %v2287_v44  ;;  %v2970_v43 = vld [vmem:[%s5715_s13 + $0x28] sm:$0xff]  ;;  %v2972_v44 = vld [vmem:[%s5715_s13 + $0x38] sm:$0xff] }
 0xde7   : > { %v2449_v45 = vpop.f32.mrb[2].mxu0 }
 0xde8   : > { %v3660_v46 = vpop.f32.mrb[3].mxu0  ;;  %v2453_v47 = vsel %vm1125_vm3, %v2449_v45, -inf }
 0xde9   : > { %2454 = vmax.xlane.f32.xlu0 %v2453_v47  ;;  %v3743_v46 = vpack.c.bf16 %v2972_v44, %v2970_v43 }
 0xdeb   : > { %v2619_v48 = vpop.f32.mrb[4].mxu0 }
 0xdec   : > { %v3670_v49 = vpop.f32.mrb[5].mxu0  ;;  %v2623_v50 = vsel %vm1125_vm3, %v2619_v48, -inf }
 0xded   : > { %2624 = vmax.xlane.f32.xlu0 %v2623_v50 }
 0xdef   : > { %v2789_v51 = vpop.f32.mrb[6].mxu0 }
 0xdf0   : > { %v3680_v52 = vpop.f32.mrb[7].mxu0  ;;  %v2793_v53 = vsel %vm1125_vm3, %v2789_v51, -inf }
 0xdf1   : > { %2794 = vmax.xlane.f32.xlu1 %v2793_v53  ;;  %v2969_v53 = vld [vmem:[%s5715_s13 + $0x20] sm:$0xff] }
 0xe02   : > { %2464 = vrot.lane.b32.xlu1 %v5399_v35, %s4574_s4 }
 0xe72   : > { %v2289_v54 = vpop.xlane.xlu1 %2288 }
 0xe73   : > { %v2290_v55 = vsub.f32 %v2283_v42, %v2289_v54  ;;  %v2971_v54 = vld [vmem:[%s5715_s13 + $0x30] sm:$0xff] }
 0xe75   : > { %v2291_v56 = vmul.f32 1.442695, %v2290_v55  ;;  %v3745_v55 = vpack.c.bf16 %v2971_v54, %v2969_v53 }
 0xe76   : > { %v2455_v57 = vpop.xlane.xlu0 %2454 }
 0xe77   : > { %3986 = vpow2.f32 %v2291_v56  ;;  %v2456_v58 = vsub.f32 %v2449_v45, %v2455_v57  ;;  %v3464_v56 = vld [vmem:[#allocation24] ss:$0 sm:$0xff] }
 0xe79   : > { %v2457_v59 = vmul.f32 1.442695, %v2456_v58 }
 0xe7a   : > { %v2625_v5 = vpop.xlane.xlu0 %2624 }
 0xe7b   : > { %3988 = vpow2.f32 %v2457_v59  ;;  %v2626_v6 = vsub.f32 %v2619_v48, %v2625_v5 }
 0xe7d   : > { %v2627_v8 = vmul.f32 1.442695, %v2626_v6 }
 0xe7e   : > { %v2795_v60 = vpop.xlane.xlu1 %2794 }
 0xe7f   : > { %v2796_v61 = vsub.f32 %v2789_v51, %v2795_v60  ;;  %v2975_v60 = vlaneseq }
 0xe81   : > { %v3987_v4 = vpop.eup %3986  ;;  %v2797_v62 = vmul.f32 1.442695, %v2796_v61  ;;  %v2976_v61 = vshrl.u32 %v2975_v60, 7 }
 0xe82   : > { %v2293_v63 = vsel %vm1125_vm3, %v3987_v4, 0.0  ;;  %v2465_v12 = vpop.permute.xlu1 %2464 }
 0xe83   : > { %3990 = vpow2.f32 %v2797_v62  ;;  %2294 = vadd.xlane.f32.xlu0 %v2293_v63  ;;  %v2981_v63 = vsub.s32 1, %v2976_v61 }
 0xe84   : > { %3992 = vpow2.f32 %v2627_v8 }
 0xe85   : > { %v3989_v0 = vpop.eup %3988 }
 0xe86   : > { %v2459_v1 = vsel %vm1125_vm3, %v3989_v0, 0.0 }
 0xe87   : > { %2460 = vadd.xlane.f32.xlu1 %v2459_v1 }
 0xe8d   : > { %v3991_v2 = vpop.eup %3990 }
 0xe8e   : > { %v2799_v3 = vsel %vm1125_vm3, %v3991_v2, 0.0  ;;  %v3993_v10 = vpop.eup %3992 }
 0xe8f   : > { %2800 = vadd.xlane.f32.xlu1 %v2799_v3  ;;  %v2629_v11 = vsel %vm1125_vm3, %v3993_v10, 0.0 }
 0xe99   : > { %2298 = vrot.lane.b32.xlu0 %v5399_v35, %s4575_s5 }
 0xea0   : > { %2634 = vrot.lane.b32.xlu1 %v5399_v35, %s4576_s10 }
 0xeb8   : > { %2630 = vadd.xlane.f32.xlu0 %v2629_v11 }
 0xece   : > { %2804 = vrot.lane.b32.xlu0 %v5399_v35, %s4577_s2  ;;  %v2127_v35 = vld [vmem:[#allocation22 + $0x8] sm:$0xff] }
 0xecf   : > { %v3734_v7 = vpack.c.bf16 %v2127_v35, %v2126_v34 }
 0xed1   : > { %3735 = vmatpush3.bf16.msra.mxu0 %v3734_v7 }
 0xed2   : > { %3736 = vmatprep.subr.bf16.mxu0 %v4564_v28  ;;  %v2967_v28 = vld [vmem:[%s5715_s13 + $0x10] sm:$0xff] }
 0xed3   : > { %v3741_v45 = vpack.c.bf16 %v2967_v28, %v2965_v40 }
 0xed5   : > { %3738 = vmatpush3.bf16.msra.mxu0 %v3737_v38 }
 0xf10   : > { %v2295_v13 = vpop.xlane.xlu0 %2294 }
 0xf11   : > { %3994 = vrcp.f32 %v2295_v13 }
 0xf14   : > { %v2299_v14 = vpop.permute.xlu0 %2298  ;;  %v2461_v15 = vpop.xlane.xlu1 %2460 }
 0xf15   : > { %3996 = vrcp.f32 %v2461_v15  ;;  %3652 = vmatpush3.msra.mxu1 %v2299_v14 }
 0xf16   : > { %3661 = vmatprep.subr.mxu1 %v4566_v31 }
 0xf1b   : > { %v3995_v16 = vpop.eup %3994 }
 0xf1c   : > { %v2801_v17 = vpop.xlane.xlu1 %2800  ;;  %v2297_v18 = vmul.f32 %v3995_v16, %v3987_v4  ;;  %v2977_v4 = vsub.s32 0, %v2976_v61 }
 0xf1e   : > { %3654 = vmatmul.mubr.msk.f32.vlgmr.msra.gmra.mrb[2].mxu1 %vm1125_vm3, %v2297_v18 }
 0xf1f   : > { %v3997_v19 = vpop.eup %3996  ;;  %3662 = vmatpush3.msra.mxu1 %v2465_v12  ;;  %3663 = vmatprep.mubr.msk.f32.mxu1 %vm4565_vm8, %v4566_v31 }
 0xf20   : > { %v2635_v20 = vpop.permute.xlu1 %2634  ;;  %3671 = vmatprep.subr.mxu1 %v4566_v31  ;;  %v2463_v21 = vmul.f32 %v3997_v19, %v3989_v0 }
 0xf22   : > { %3664 = vmatmul.mubr.msk.f32.vlgmr.msra.gmra.mrb[4].mxu1 %vm1125_vm3, %v2463_v21 }
 0xf23   : > { %3672 = vmatpush3.msra.mxu1 %v2635_v20  ;;  %3673 = vmatprep.mubr.msk.f32.mxu1 %vm4565_vm8, %v4566_v31 }
 0xf24   : > { %3681 = vmatprep.subr.mxu1 %v4566_v31 }
 0xf45   : > { %v2631_v22 = vpop.xlane.xlu0 %2630 }
 0xf46   : > { %3998 = vrcp.f32 %v2631_v22 }
 0xf47   : > { %4000 = vrcp.f32 %v2801_v17 }
 0xf49   : > { %v2805_v26 = vpop.permute.xlu0 %2804 }
 0xf50   : > { %v3999_v23 = vpop.eup %3998 }
 0xf51   : > { %v2633_v24 = vmul.f32 %v3999_v23, %v3993_v10  ;;  %v4001_v25 = vpop.eup %4000 }
 0xf52   : > { %v2803_v27 = vmul.f32 %v4001_v25, %v3991_v2 }
 0xf53   : > { %3674 = vmatmul.mubr.msk.f32.vlgmr.msra.gmra.mrb[6].mxu1 %vm1125_vm3, %v2633_v24 }
 0xf54   : > { %3682 = vmatpush3.msra.mxu1 %v2805_v26  ;;  %3683 = vmatprep.mubr.msk.f32.mxu1 %vm4565_vm8, %v4566_v31 }
 0xf57   : > { %3684 = vmatmul.mubr.msk.f32.vlgmr.msra.gmra.mrb[8].mxu1 %vm1125_vm3, %v2803_v27 }
 0xf58   : > { %3052 = vmatprep.mubr.f32.mxu1 %v4566_v31  ;;  %v2966_v31 = vld [vmem:[%s5715_s13 + $0x8] sm:$0xff] }
 0xf59   : > { %v3739_v42 = vpack.c.bf16 %v2968_v39, %v2966_v31 }
 0xf5b   : > { %3740 = vmatprep.subr.bf16.mxu1 %v3739_v42 }
 0xf5c   : > { %3742 = vmatpush1.bf16.msra.mxu1 %v3741_v45 }
 0xf5d   : > { %3744 = vmatprep.subr.bf16.mxu1 %v3743_v46 }
 0xf60   : > { %3746 = vmatpush1.bf16.msra.mxu1 %v3745_v55 }
 0xff1   : > { %v2370_v29 = vpop.f32.mrb[2].mxu1 }
 0xff2   : > { %2374 = vst.msk [vmem:[#allocation3] sm:$0xff] %vm1125_vm3, %v2370_v29  ;;  %v3655_v30 = vpop.f32.mrb[3].mxu1 }
 0xff5   : > { %v2536_v32 = vpop.f32.mrb[4].mxu1 }
 0xff6   : > { %2541 = vrot.lane.b32.xlu1 %v2536_v32, %s4578_s29  ;;  %v3665_v33 = vpop.f32.mrb[5].mxu1  ;;  %s5716_s29 = sld [smem:[#allocation64_spill]] }
 0xffc   : > { %v2973_v62 = vld [vmem:[%s5716_s29] sm:$0x3] }
 0xffd   : > { %v2978_v0 = vrot.slane %v2973_v62, %v2977_v4  ;;  %v2982_v1 = vrot.slane %v2973_v62, %v2981_v63 }
0x1026   : > { %v2706_v9 = vpop.f32.mrb[6].mxu1 }
0x1027   : > { %2711 = vrot.lane.b32.xlu0 %v2706_v9, %s4579_s16  ;;  %v3675_v41 = vpop.f32.mrb[7].mxu1 }
0x102a   : > { %v2876_v47 = vpop.f32.mrb[8].mxu1 }
0x102b   : > { %2881 = vrot.lane.b32.xlu1 %v2876_v47, %s4580_s12  ;;  %v3685_v48 = vpop.f32.mrb[9].mxu1 }
0x1068   : > { %v2542_v49 = vpop.permute.xlu1 %2541 }
0x1069   : > { %2544 = vst.msk [vmem:[#allocation3] sm:$0xff] %vm1457_vm4, %v2542_v49 }
0x1099   : > { %v2712_v50 = vpop.permute.xlu0 %2711 }
0x109a   : > { %2714 = vst.msk [vmem:[#allocation3] sm:$0xff] %vm1628_vm5, %v2712_v50 }
0x109d   : > { %v2882_v51 = vpop.permute.xlu1 %2881 }
0x109e   : > { %2884 = vst.msk [vmem:[#allocation3] sm:$0xff] %vm1799_vm6, %v2882_v51 }
0x10a5   : > { %v2885_v52 = vld [vmem:[#allocation3] sm:$0xff] }
0x10a6   : > { %3695 = vmatmul.mubr.msk.f32.vlgmr.msra.gmra.mrb[8].mxu0 %vm1048_vm2, %v2885_v52 }
0x1179   : > { %v2961_v57 = vpop.f32.mrb[8].mxu0 }
0x117a   : > { %v2962_v58 = vadd.f32 %v3464_v56, %v2961_v57  ;;  %v3696_v59 = vpop.f32.mrb[9].mxu0 }
0x117c   : > { %3466 = vmatmul.mubr.msk.f32.vlgmr.msra.gmra.mrb[10].mxu1 %vm1048_vm2, %v2962_v58 }
0x124f   : > { %v3054_v2 = vpop.f32.mrb[10].mxu1 }
0x1250   : > { %v3055_v3 = vadd.f32 %v3054_v2, %v2978_v0  ;;  %v3056_v5 = vpop.f32.mrb[11].mxu1 }
0x1251   : > { %v3057_v6 = vadd.f32 %v3056_v5, %v2982_v1 }
0x1252   : > { %3059 = vst [vmem:[%s5259_s28] sm:$0xff] %v3055_v3 }
0x1253   : > { %3060 = vst [vmem:[%s5259_s28 + $0x8] sm:$0xff] %v3057_v6 }
0x1254 PF: > { %s5717_s18 = sld [smem:[#allocation37_spill]]  ;;  %s5718_s9 = sld [smem:[#allocation65_spill]] }
0x1255   : > { %s3076_s16 = sshll.u32 %s5259_s28, 4  ;;  %s3062_s11 = scalar_lea.sflag [#allocation6], %s5192_s7  ;;  %s3077_s16 = int_to_ptr.vmem [resolvable:$true] %s3076_s16 }
0x1256   : > { %s4384_s0 = scalar_lea.vmem %s3077_s16, 256  ;;  %p5719_p12 = scmp.ne.s32.totalorder %s5670_s17, 0 }
0x1257   : > { %p4385_p7 = scmp.ne.s32.totalorder %s3077_s16, %s4384_s0  ;;  %s4581_s24 = smov [#allocation25]  }
0x1258   : > { %s4388_s25 = sshll.u32 %s4581_s24, 4  ;;  %s4389_s25 = int_to_ptr.vmem [resolvable:$false] %s4388_s25 }
0x1259   : > { %p4386_p5 = pnand %p4385_p7, %p5719_p12  ;;  %s4390_s15 = scalar_lea.vmem %s4389_s25, 512 }
0x125a   : > { %s3476_s8 = sshll.u32 %s5717_s18, 8  ;;  %p4391_p8 = scmp.lt.s32.totalorder %s3077_s16, %s4389_s25 }
0x125b   : > { %s5495_s26 = scalar_lea.hbm %s5718_s9, %s3476_s8  ;;  %p4387_p6 = pneg %p4386_p5 }
0x125c   : > { %p4392_p2 = scmp.lt.s32.totalorder %s4390_s15, %s4384_s0 }
0x125e   : > { %p4393_p10 = por %p4392_p2, %p4391_p8 }
0x1260   : > { %p4394_p1 = pnand %p4393_p10, %p4387_p6 }
0x1262   : > { %4397 = shalt.err (!%p4394_p1)
}
0x1263   : > { %s4398_s7 = scalar_lea.hbm %s5495_s26, 256  ;;  %s4402_s12 = scalar_lea.hbm %s5718_s9, 512 }
0x1264   : > { %p4399_p13 = scmp.ne.s32.totalorder %s5495_s26, %s4398_s7  ;;  %p4403_p11 = scmp.lt.u32.totalorder %s5495_s26, %s5718_s9 }
0x1265   : > { %p4404_p4 = scmp.lt.u32.totalorder %s4402_s12, %s4398_s7  ;;  %p4406_p7 = scmp.lt.u32.totalorder %s4398_s7, %s5495_s26 }
0x1266   : > { %p4400_p9 = pnand %p4399_p13, %p5719_p12 }
0x1267   : > { %p4405_p0 = por %p4404_p4, %p4403_p11 }
0x1268   : > { %p4401_p3 = pneg %p4400_p9 }
0x1269   : > { %p4407_p5 = por %p4406_p7, %p4405_p0 }
0x126b   : > { %p4408_p6 = pnand %p4407_p5, %p4401_p3 }
0x126d   : > { %4411 = shalt.err (!%p4408_p6)
}
0x126e   : > { %3781 = dma.vmem_to_hbm [thread:$0]  (%p5719_p12), %s3077_s16, 256, %s5495_s26, %s3062_s11  }
0x126f PF: > { %p3837_p8 = scmp.ge.s32.totalorder %s4530_s3, 2  ;;  %s3088_s4 = sand.u32 1, %s4502_s21  }
0x1270   : > { %p5720_p2 = scmp.ne.s32.totalorder %s5672_s6, 0  ;;  %s3089_s5 = scalar_lea.sflag [#allocation6], %s3088_s4 }
0x1272   : > { %p3825_p10 = pnand %p3837_p8, %p5720_p2 }
0x1274   : > { %4485 = dma.done.wait (!%p3825_p10), %s3089_s5, 256  }
0x1275   : > { %4487 = vsyncadd (!%p3825_p10), %s3089_s5, 4294967040  ;;  %s49_s3 = sadd.s32 1, %s4530_s3   ;;  %s5721_s0 = sld [smem:[#allocation34_spill]] }
0x1276   : > { %p46_p1 = scmp.ge.s32.totalorder %s49_s3, 6   ;;  %s5722_s10 = sld [smem:[#allocation44_spill]] }
0x1277   : > { %s5723_s17 = sld [smem:[#allocation35_spill]]  ;;  %s5724_s22 = sld [smem:[#allocation45_spill]] }
0x1278   : > { %s5725_s2 = sld [smem:[#allocation38_spill]]  ;;  %s5726_s23 = sld [smem:[#allocation39_spill]] }
0x1279   : > { %s5727_s24 = sld [smem:[#allocation42_spill]]  ;;  %s5728_s25 = sld [smem:[#allocation43_spill]] }
0x127a   : > { %s5729_s30 = smov %s4498_s20  ;;  %s5731_s21 = smov %s4506_s1 }
0x127b   :  { %48 = sbr.rel (!%p46_p1) target bundleno = 40 (0x28), region = 273 }
0x127c   : > { %s5730_s20 = smov %s5722_s10 }
0x127d   : > { %s5732_s1 = smov %s5723_s17 }
0x1282   :  { %3094 = vsyncpa [#allocation5], 1 }
0x1283   :  { %3096 = vsyncpa [#allocation5 + $0x1], 1 }
0x1284   :  { %3097 = vsyncpa [#allocation8], 1 }
0x1285   :  { %3099 = vsyncpa [#allocation8 + $0x1], 1 }
0x1286   :  { %3100 = vsyncpa [#allocation11], 1 }
0x1287   :  { %3102 = vsyncpa [#allocation11 + $0x1], 1 }
0x1288   :  { %3103 = vsyncpa [#allocation14], 1 }
0x1289   :  { %3105 = vsyncpa [#allocation14 + $0x1], 1 }
0x128a   :  { %3106 = vsyncpa [#allocation17], 1 }
0x128b   :  { %3108 = vsyncpa [#allocation17 + $0x1], 1 }
0x128c   :  { %3109 = vsyncpa [#allocation20], 1 }
0x128d   :  { %3110 = vsyncpa [#allocation23], 1 }
0x128e   :  { %3111 = vsyncpa [#allocation6], 1 }
0x128f   :  { %3113 = vsyncpa [#allocation6 + $0x1], 1 }

</bundles_post_ra>
